<compile_context>
chip_gen: v7x
topology: tpu7x:2x2x1
jax: 0.10.0
libtpu: 0.0.40
codegen_flags: <defaults>
</compile_context>

<pallas_src>
import jax
import jax.numpy as jnp
from jax import lax
from jax.experimental import pallas as pl
from jax.experimental.pallas import tpu as pltpu

EMBED_SIZE = 256
HEADS = 8
HEAD_DIM = EMBED_SIZE // HEADS   # 32
SEQ_LEN = 10
BATCH = 2
ROWS = BATCH * SEQ_LEN           # 20


def self_attention_kernel(xq_ref, xk_ref, wq_ref, wkkv_ref, woT_ref, bo_ref, mask_ref,
                          o_ref, cat_ref):
    """Single grid step; the whole problem (<1 MiB) is resident in VMEM.

    xq_ref/xk_ref: (ROWS, E) bf16        flattened (batch*seq, embed), lane-dense
    wq_ref:        (E, E)   bf16         block-diag of (Wq.T * 1/sqrt(E))
    wkkv_ref:      (E, 2E)  bf16         [block-diag Wk.T | block-diag (Wk.T @ Wv.T)]
    woT_ref:       (E, E)   bf16         Wo.T
    bo_ref:        (1, E)   f32
    mask_ref:      (ROWS, ROWS) f32      1.0 where rows/cols are in the same batch
    o_ref:         (ROWS, E) f32
    cat_ref:       (ROWS, E) f32 scratch head-concatenated attention output
    """
    # --- Projections: 2 full-width MXU matmuls for the whole (fused) batch. ---
    qp = jnp.dot(xq_ref[...], wq_ref[...], preferred_element_type=jnp.float32)   # (20,256)
    kv = jnp.dot(xk_ref[...], wkkv_ref[...], preferred_element_type=jnp.float32)  # (20,512)
    kp = kv[:, :EMBED_SIZE]
    vp = kv[:, EMBED_SIZE:]

    # --- Head-major stacks (H, ROWS, hd) so attention is fully batched over heads. ---
    def head_stack(x):
        return jnp.stack(
            [x[:, h * HEAD_DIM:(h + 1) * HEAD_DIM] for h in range(HEADS)], axis=0
        ).astype(jnp.bfloat16)

    qh = head_stack(qp)   # (8, 20, 32)  (softmax scale already folded into Wq)
    kh = head_stack(kp)
    vh = head_stack(vp)

    # --- Scores for all heads in one batched dot: (8, 20, 20) f32. ---
    s = lax.dot_general(qh, kh, (((2,), (2,)), ((0,), (0,))),
                        preferred_element_type=jnp.float32)

    # --- One vectorized softmax; cross-batch pairs zeroed (exact per-batch softmax). ---
    s = s - jnp.max(s, axis=-1, keepdims=True)
    p = jnp.exp(s) * mask_ref[...][None, :, :]
    p = p * pl.reciprocal(jnp.sum(p, axis=-1, keepdims=True), approx=True)

    # --- Batched PV: (8, 20, 32). ---
    o_h = lax.dot_general(p.astype(jnp.bfloat16), vh, (((2,), (1,)), ((0,), (0,))),
                          preferred_element_type=jnp.float32)

    # --- Concatenate heads back onto the lane axis, then ONE output projection. ---
    for h in range(HEADS):
        cat_ref[:, h * HEAD_DIM:(h + 1) * HEAD_DIM] = o_h[h]
    out = jnp.dot(cat_ref[...].astype(jnp.bfloat16), woT_ref[...],
                  preferred_element_type=jnp.float32) + bo_ref[...]
    o_ref[...] = out.astype(o_ref.dtype)


def prepare_params(Wq, Wk, Wv, Wo, bo):
    """One-time host-side weight prep (kept off the per-call hot path)."""
    scale = 1.0 / (EMBED_SIZE ** 0.5)
    eye_h = jnp.eye(HEADS, dtype=jnp.float32)
    wq_bd = jnp.kron(eye_h, Wq.T * scale).astype(jnp.bfloat16)           # (E, E)
    wk_bd = jnp.kron(eye_h, Wk.T)                                        # (E, E)
    wkv_bd = jnp.kron(eye_h, Wk.T @ Wv.T)                                # quirk: V = Wv(Wk(K))
    wkkv = jnp.concatenate([wk_bd, wkv_bd], axis=1).astype(jnp.bfloat16)  # (E, 2E)
    woT = Wo.T.astype(jnp.bfloat16)                                      # (E, E)
    bo2 = bo.reshape(1, EMBED_SIZE).astype(jnp.float32)                  # (1, E)
    # Block mask: 1.0 where (row, col) belong to the same batch, else 0.0.
    mask = jnp.kron(jnp.eye(BATCH, dtype=jnp.float32),
                    jnp.ones((SEQ_LEN, SEQ_LEN), jnp.float32))           # (ROWS, ROWS)
    return wq_bd, wkkv, woT, bo2, mask


def self_attention(q, k, params):
    wq_bd, wkkv, woT, bo2, mask = params
    N, L, E = q.shape
    assert N == BATCH and L == SEQ_LEN and E == EMBED_SIZE
    R = N * L

    xq = q.reshape(R, E).astype(jnp.bfloat16)
    xk = k.reshape(R, E).astype(jnp.bfloat16)

    out = pl.pallas_call(
        self_attention_kernel,
        out_shape=jax.ShapeDtypeStruct((R, E), jnp.float32),
        grid=(1,),                                   # single step; everything resident
        in_specs=[
            pl.BlockSpec((R, E), lambda i: (0, 0)),
            pl.BlockSpec((R, E), lambda i: (0, 0)),
            pl.BlockSpec((E, E), lambda i: (0, 0)),
            pl.BlockSpec((E, 2 * E), lambda i: (0, 0)),
            pl.BlockSpec((E, E), lambda i: (0, 0)),
            pl.BlockSpec((1, E), lambda i: (0, 0)),
            pl.BlockSpec((R, R), lambda i: (0, 0)),
        ],
        out_specs=pl.BlockSpec((R, E), lambda i: (0, 0)),
        scratch_shapes=[pltpu.VMEM((R, E), jnp.float32)],
        compiler_params=pltpu.CompilerParams(dimension_semantics=("arbitrary",)),
    )(xq, xk, wq_bd, wkkv, woT, bo2, mask)
    return out.reshape(N, L, E)


def reference_forward(q, k, Wq, Wk, Wv, Wo, bo):
    """Pure-JAX (f32) mirror of the PyTorch forward, including its quirks."""
    N, L, E = q.shape
    H, hd = HEADS, HEAD_DIM
    q_r = q.reshape(N, L, H, hd)
    k_r = k.reshape(N, L, H, hd)
    qp = q_r @ Wq.T
    kp = k_r @ Wk.T
    vp = kp @ Wv.T                     # quirk: W_v applied to W_k(keys)
    score = jnp.einsum('nqhd,nkhd->nhqk', qp, kp)
    attn = jax.nn.softmax(score / (E ** 0.5), axis=3)
    out = jnp.einsum('nhql,nlhd->nqhd', attn, vp).reshape(N, L, H * hd)
    return out @ Wo.T + bo


if __name__ == "__main__":
    key = jax.random.PRNGKey(0)
    kq, kk, k1, k2, k3, k4, k5 = jax.random.split(key, 7)

    # Deterministic synthetic parameters (PyTorch-Linear-style uniform init).
    lim_h = 1.0 / (HEAD_DIM ** 0.5)
    lim_e = 1.0 / (EMBED_SIZE ** 0.5)
    Wq = jax.random.uniform(k1, (HEAD_DIM, HEAD_DIM), jnp.float32, -lim_h, lim_h)
    Wk = jax.random.uniform(k2, (HEAD_DIM, HEAD_DIM), jnp.float32, -lim_h, lim_h)
    Wv = jax.random.uniform(k3, (HEAD_DIM, HEAD_DIM), jnp.float32, -lim_h, lim_h)
    Wo = jax.random.uniform(k4, (EMBED_SIZE, EMBED_SIZE), jnp.float32, -lim_e, lim_e)
    bo = jax.random.uniform(k5, (EMBED_SIZE,), jnp.float32, -lim_e, lim_e)

    # Inputs: querys and key, both (N, L, E); mask is None (no masking path).
    q = jax.random.uniform(kq, (BATCH, SEQ_LEN, EMBED_SIZE), jnp.float32)
    k = jax.random.uniform(kk, (BATCH, SEQ_LEN, EMBED_SIZE), jnp.float32)

    params = prepare_params(Wq, Wk, Wv, Wo, bo)      # one-time prep, off the hot path

    out = self_attention(q, k, params)
    out = jax.block_until_ready(out)

    ref = reference_forward(q, k, Wq, Wk, Wv, Wo, bo)
    assert out.shape == (BATCH, SEQ_LEN, EMBED_SIZE)
    assert jnp.allclose(out, ref, atol=5e-2, rtol=5e-2), "Pallas output mismatch vs reference"

    print("KERNEL_OK")
</pallas_src>

<mosaic_0001>
module attributes {stable_mosaic.version = 11 : i64} {
  func.func @self_attention_kernel(%arg0: i32, %arg1: memref<20x256xbf16, #tpu.memory_space<vmem>>, %arg2: memref<20x256xbf16, #tpu.memory_space<vmem>>, %arg3: memref<256x256xbf16, #tpu.memory_space<vmem>>, %arg4: memref<256x512xbf16, #tpu.memory_space<vmem>>, %arg5: memref<256x256xbf16, #tpu.memory_space<vmem>>, %arg6: memref<1x256xf32, #tpu.memory_space<vmem>>, %arg7: memref<20x20xf32, #tpu.memory_space<vmem>>, %arg8: memref<20x256xf32, #tpu.memory_space<vmem>>, %arg9: memref<20x256xf32, #tpu.memory_space<vmem>>) attributes {dimension_semantics = [#tpu.dimension_semantics<arbitrary>], iteration_bounds = array<i64: 1>, scalar_prefetch = 0 : i64, scratch_operands = 1 : i64, tpu.core_type = #tpu.core_type<tc>, window_params = [{pipeline_mode = #tpu.pipeline_mode<synchronous>, transform_indices = @transform_0, window_bounds = array<i64: 20, 256>}, {pipeline_mode = #tpu.pipeline_mode<synchronous>, transform_indices = @transform_1, window_bounds = array<i64: 20, 256>}, {pipeline_mode = #tpu.pipeline_mode<synchronous>, transform_indices = @transform_2, window_bounds = array<i64: 256, 256>}, {pipeline_mode = #tpu.pipeline_mode<synchronous>, transform_indices = @transform_3, window_bounds = array<i64: 256, 512>}, {pipeline_mode = #tpu.pipeline_mode<synchronous>, transform_indices = @transform_4, window_bounds = array<i64: 256, 256>}, {pipeline_mode = #tpu.pipeline_mode<synchronous>, transform_indices = @transform_5, window_bounds = array<i64: 1, 256>}, {pipeline_mode = #tpu.pipeline_mode<synchronous>, transform_indices = @transform_6, window_bounds = array<i64: 20, 20>}, {pipeline_mode = #tpu.pipeline_mode<synchronous>, transform_indices = @transform_7, window_bounds = array<i64: 20, 256>}]} {
    %c0 = arith.constant 0 : index
    %c0_0 = arith.constant 0 : index
    %0 = vector.load %arg1[%c0, %c0_0] : memref<20x256xbf16, #tpu.memory_space<vmem>>, vector<20x256xbf16>
    %c0_1 = arith.constant 0 : index
    %c0_2 = arith.constant 0 : index
    %1 = vector.load %arg3[%c0_1, %c0_2] : memref<256x256xbf16, #tpu.memory_space<vmem>>, vector<256x256xbf16>
    %cst = arith.constant dense<0.000000e+00> : vector<20x256xf32>
    %2 = tpu.matmul %0, %1, %cst {dimension_numbers = #tpu.dot_dimension_numbers<[1], [0], [0], [1], [0, 0, 1, 1], [], []>} : vector<20x256xbf16>, vector<256x256xbf16>, vector<20x256xf32> -> vector<20x256xf32>
    %c0_3 = arith.constant 0 : index
    %c0_4 = arith.constant 0 : index
    %3 = vector.load %arg2[%c0_3, %c0_4] : memref<20x256xbf16, #tpu.memory_space<vmem>>, vector<20x256xbf16>
    %c0_5 = arith.constant 0 : index
    %c0_6 = arith.constant 0 : index
    %4 = vector.load %arg4[%c0_5, %c0_6] : memref<256x512xbf16, #tpu.memory_space<vmem>>, vector<256x512xbf16>
    %cst_7 = arith.constant dense<0.000000e+00> : vector<20x512xf32>
    %5 = tpu.matmul %3, %4, %cst_7 {dimension_numbers = #tpu.dot_dimension_numbers<[1], [0], [0], [1], [0, 0, 1, 1], [], []>} : vector<20x256xbf16>, vector<256x512xbf16>, vector<20x512xf32> -> vector<20x512xf32>
    %6 = vector.extract_strided_slice %5 {offsets = [0, 0], sizes = [20, 256], strides = [1, 1]} : vector<20x512xf32> to vector<20x256xf32>
    %7 = vector.extract_strided_slice %5 {offsets = [0, 256], sizes = [20, 256], strides = [1, 1]} : vector<20x512xf32> to vector<20x256xf32>
    %8 = vector.extract_strided_slice %2 {offsets = [0, 0], sizes = [20, 32], strides = [1, 1]} : vector<20x256xf32> to vector<20x32xf32>
    %9 = vector.extract_strided_slice %2 {offsets = [0, 32], sizes = [20, 32], strides = [1, 1]} : vector<20x256xf32> to vector<20x32xf32>
    %10 = vector.extract_strided_slice %2 {offsets = [0, 64], sizes = [20, 32], strides = [1, 1]} : vector<20x256xf32> to vector<20x32xf32>
    %11 = vector.extract_strided_slice %2 {offsets = [0, 96], sizes = [20, 32], strides = [1, 1]} : vector<20x256xf32> to vector<20x32xf32>
    %12 = vector.extract_strided_slice %2 {offsets = [0, 128], sizes = [20, 32], strides = [1, 1]} : vector<20x256xf32> to vector<20x32xf32>
    %13 = vector.extract_strided_slice %2 {offsets = [0, 160], sizes = [20, 32], strides = [1, 1]} : vector<20x256xf32> to vector<20x32xf32>
    %14 = vector.extract_strided_slice %2 {offsets = [0, 192], sizes = [20, 32], strides = [1, 1]} : vector<20x256xf32> to vector<20x32xf32>
    %15 = vector.extract_strided_slice %2 {offsets = [0, 224], sizes = [20, 32], strides = [1, 1]} : vector<20x256xf32> to vector<20x32xf32>
    %16 = vector.shape_cast %8 : vector<20x32xf32> to vector<1x20x32xf32>
    %17 = vector.shape_cast %9 : vector<20x32xf32> to vector<1x20x32xf32>
    %18 = vector.shape_cast %10 : vector<20x32xf32> to vector<1x20x32xf32>
    %19 = vector.shape_cast %11 : vector<20x32xf32> to vector<1x20x32xf32>
    %20 = vector.shape_cast %12 : vector<20x32xf32> to vector<1x20x32xf32>
    %21 = vector.shape_cast %13 : vector<20x32xf32> to vector<1x20x32xf32>
    %22 = vector.shape_cast %14 : vector<20x32xf32> to vector<1x20x32xf32>
    %23 = vector.shape_cast %15 : vector<20x32xf32> to vector<1x20x32xf32>
    %24 = tpu.concatenate %16, %17, %18, %19, %20, %21, %22, %23 in 0 : vector<1x20x32xf32>, vector<1x20x32xf32>, vector<1x20x32xf32>, vector<1x20x32xf32>, vector<1x20x32xf32>, vector<1x20x32xf32>, vector<1x20x32xf32>, vector<1x20x32xf32> -> vector<8x20x32xf32>
    %25 = arith.truncf %24 : vector<8x20x32xf32> to vector<8x20x32xbf16>
    %26 = vector.extract_strided_slice %6 {offsets = [0, 0], sizes = [20, 32], strides = [1, 1]} : vector<20x256xf32> to vector<20x32xf32>
    %27 = vector.extract_strided_slice %6 {offsets = [0, 32], sizes = [20, 32], strides = [1, 1]} : vector<20x256xf32> to vector<20x32xf32>
    %28 = vector.extract_strided_slice %6 {offsets = [0, 64], sizes = [20, 32], strides = [1, 1]} : vector<20x256xf32> to vector<20x32xf32>
    %29 = vector.extract_strided_slice %6 {offsets = [0, 96], sizes = [20, 32], strides = [1, 1]} : vector<20x256xf32> to vector<20x32xf32>
    %30 = vector.extract_strided_slice %6 {offsets = [0, 128], sizes = [20, 32], strides = [1, 1]} : vector<20x256xf32> to vector<20x32xf32>
    %31 = vector.extract_strided_slice %6 {offsets = [0, 160], sizes = [20, 32], strides = [1, 1]} : vector<20x256xf32> to vector<20x32xf32>
    %32 = vector.extract_strided_slice %6 {offsets = [0, 192], sizes = [20, 32], strides = [1, 1]} : vector<20x256xf32> to vector<20x32xf32>
    %33 = vector.extract_strided_slice %6 {offsets = [0, 224], sizes = [20, 32], strides = [1, 1]} : vector<20x256xf32> to vector<20x32xf32>
    %34 = vector.shape_cast %26 : vector<20x32xf32> to vector<1x20x32xf32>
    %35 = vector.shape_cast %27 : vector<20x32xf32> to vector<1x20x32xf32>
    %36 = vector.shape_cast %28 : vector<20x32xf32> to vector<1x20x32xf32>
    %37 = vector.shape_cast %29 : vector<20x32xf32> to vector<1x20x32xf32>
    %38 = vector.shape_cast %30 : vector<20x32xf32> to vector<1x20x32xf32>
    %39 = vector.shape_cast %31 : vector<20x32xf32> to vector<1x20x32xf32>
    %40 = vector.shape_cast %32 : vector<20x32xf32> to vector<1x20x32xf32>
    %41 = vector.shape_cast %33 : vector<20x32xf32> to vector<1x20x32xf32>
    %42 = tpu.concatenate %34, %35, %36, %37, %38, %39, %40, %41 in 0 : vector<1x20x32xf32>, vector<1x20x32xf32>, vector<1x20x32xf32>, vector<1x20x32xf32>, vector<1x20x32xf32>, vector<1x20x32xf32>, vector<1x20x32xf32>, vector<1x20x32xf32> -> vector<8x20x32xf32>
    %43 = arith.truncf %42 : vector<8x20x32xf32> to vector<8x20x32xbf16>
    %44 = vector.extract_strided_slice %7 {offsets = [0, 0], sizes = [20, 32], strides = [1, 1]} : vector<20x256xf32> to vector<20x32xf32>
    %45 = vector.extract_strided_slice %7 {offsets = [0, 32], sizes = [20, 32], strides = [1, 1]} : vector<20x256xf32> to vector<20x32xf32>
    %46 = vector.extract_strided_slice %7 {offsets = [0, 64], sizes = [20, 32], strides = [1, 1]} : vector<20x256xf32> to vector<20x32xf32>
    %47 = vector.extract_strided_slice %7 {offsets = [0, 96], sizes = [20, 32], strides = [1, 1]} : vector<20x256xf32> to vector<20x32xf32>
    %48 = vector.extract_strided_slice %7 {offsets = [0, 128], sizes = [20, 32], strides = [1, 1]} : vector<20x256xf32> to vector<20x32xf32>
    %49 = vector.extract_strided_slice %7 {offsets = [0, 160], sizes = [20, 32], strides = [1, 1]} : vector<20x256xf32> to vector<20x32xf32>
    %50 = vector.extract_strided_slice %7 {offsets = [0, 192], sizes = [20, 32], strides = [1, 1]} : vector<20x256xf32> to vector<20x32xf32>
    %51 = vector.extract_strided_slice %7 {offsets = [0, 224], sizes = [20, 32], strides = [1, 1]} : vector<20x256xf32> to vector<20x32xf32>
    %52 = vector.shape_cast %44 : vector<20x32xf32> to vector<1x20x32xf32>
    %53 = vector.shape_cast %45 : vector<20x32xf32> to vector<1x20x32xf32>
    %54 = vector.shape_cast %46 : vector<20x32xf32> to vector<1x20x32xf32>
    %55 = vector.shape_cast %47 : vector<20x32xf32> to vector<1x20x32xf32>
    %56 = vector.shape_cast %48 : vector<20x32xf32> to vector<1x20x32xf32>
    %57 = vector.shape_cast %49 : vector<20x32xf32> to vector<1x20x32xf32>
    %58 = vector.shape_cast %50 : vector<20x32xf32> to vector<1x20x32xf32>
    %59 = vector.shape_cast %51 : vector<20x32xf32> to vector<1x20x32xf32>
    %60 = tpu.concatenate %52, %53, %54, %55, %56, %57, %58, %59 in 0 : vector<1x20x32xf32>, vector<1x20x32xf32>, vector<1x20x32xf32>, vector<1x20x32xf32>, vector<1x20x32xf32>, vector<1x20x32xf32>, vector<1x20x32xf32>, vector<1x20x32xf32> -> vector<8x20x32xf32>
    %61 = arith.truncf %60 : vector<8x20x32xf32> to vector<8x20x32xbf16>
    %cst_8 = arith.constant dense<0.000000e+00> : vector<8x20x20xf32>
    %62 = tpu.matmul %25, %43, %cst_8 {dimension_numbers = #tpu.dot_dimension_numbers<[2], [2], [1], [1], [0, 0, 0, 1, 1, 1], [0], [0]>} : vector<8x20x32xbf16>, vector<8x20x32xbf16>, vector<8x20x20xf32> -> vector<8x20x20xf32>
    %cst_9 = arith.constant dense<0xFF800000> : vector<8x20xf32>
    %63 = vector.multi_reduction <maximumf>, %62, %cst_9 [2] : vector<8x20x20xf32> to vector<8x20xf32>
    %64 = vector.shape_cast %63 : vector<8x20xf32> to vector<8x20x1xf32>
    %65 = vector.broadcast %64 : vector<8x20x1xf32> to vector<8x20x20xf32>
    %66 = arith.subf %62, %65 : vector<8x20x20xf32>
    %67 = math.exp %66 : vector<8x20x20xf32>
    %c0_10 = arith.constant 0 : index
    %c0_11 = arith.constant 0 : index
    %68 = vector.load %arg7[%c0_10, %c0_11] : memref<20x20xf32, #tpu.memory_space<vmem>>, vector<20x20xf32>
    %69 = vector.shape_cast %68 : vector<20x20xf32> to vector<1x20x20xf32>
    %70 = vector.broadcast %69 : vector<1x20x20xf32> to vector<8x20x20xf32>
    %71 = arith.mulf %67, %70 : vector<8x20x20xf32>
    %cst_12 = arith.constant dense<0.000000e+00> : vector<8x20xf32>
    %72 = vector.multi_reduction <add>, %71, %cst_12 [2] : vector<8x20x20xf32> to vector<8x20xf32>
    %73 = vector.shape_cast %72 : vector<8x20xf32> to vector<8x20x1xf32>
    %74 = tpu.reciprocal %73 {approx = true} : vector<8x20x1xf32> -> vector<8x20x1xf32>
    %75 = vector.broadcast %74 : vector<8x20x1xf32> to vector<8x20x20xf32>
    %76 = arith.mulf %71, %75 : vector<8x20x20xf32>
    %77 = arith.truncf %76 : vector<8x20x20xf32> to vector<8x20x20xbf16>
    %cst_13 = arith.constant dense<0.000000e+00> : vector<8x20x32xf32>
    %78 = tpu.matmul %77, %61, %cst_13 {dimension_numbers = #tpu.dot_dimension_numbers<[2], [1], [1], [2], [0, 0, 0, 1, 1, 2], [0], [0]>} : vector<8x20x20xbf16>, vector<8x20x32xbf16>, vector<8x20x32xf32> -> vector<8x20x32xf32>
    %79 = vector.extract_strided_slice %78 {offsets = [0, 0, 0], sizes = [1, 20, 32], strides = [1, 1, 1]} : vector<8x20x32xf32> to vector<1x20x32xf32>
    %80 = vector.shape_cast %79 : vector<1x20x32xf32> to vector<20x32xf32>
    %c0_14 = arith.constant 0 : index
    %c0_15 = arith.constant 0 : index
    %81 = vector.load %arg9[%c0_14, %c0_15] : memref<20x256xf32, #tpu.memory_space<vmem>>, vector<20x32xf32>
    tpu.vector_store %arg9[%c0_14, %c0_15], %80 {strides = array<i32>} : memref<20x256xf32, #tpu.memory_space<vmem>>, vector<20x32xf32>,
    %82 = vector.extract_strided_slice %78 {offsets = [1, 0, 0], sizes = [1, 20, 32], strides = [1, 1, 1]} : vector<8x20x32xf32> to vector<1x20x32xf32>
    %83 = vector.shape_cast %82 : vector<1x20x32xf32> to vector<20x32xf32>
    %c0_16 = arith.constant 0 : index
    %c32 = arith.constant 32 : index
    %84 = vector.load %arg9[%c0_16, %c32] : memref<20x256xf32, #tpu.memory_space<vmem>>, vector<20x32xf32>
    tpu.vector_store %arg9[%c0_16, %c32], %83 {strides = array<i32>} : memref<20x256xf32, #tpu.memory_space<vmem>>, vector<20x32xf32>,
    %85 = vector.extract_strided_slice %78 {offsets = [2, 0, 0], sizes = [1, 20, 32], strides = [1, 1, 1]} : vector<8x20x32xf32> to vector<1x20x32xf32>
    %86 = vector.shape_cast %85 : vector<1x20x32xf32> to vector<20x32xf32>
    %c0_17 = arith.constant 0 : index
    %c64 = arith.constant 64 : index
    %87 = vector.load %arg9[%c0_17, %c64] : memref<20x256xf32, #tpu.memory_space<vmem>>, vector<20x32xf32>
    tpu.vector_store %arg9[%c0_17, %c64], %86 {strides = array<i32>} : memref<20x256xf32, #tpu.memory_space<vmem>>, vector<20x32xf32>,
    %88 = vector.extract_strided_slice %78 {offsets = [3, 0, 0], sizes = [1, 20, 32], strides = [1, 1, 1]} : vector<8x20x32xf32> to vector<1x20x32xf32>
    %89 = vector.shape_cast %88 : vector<1x20x32xf32> to vector<20x32xf32>
    %c0_18 = arith.constant 0 : index
    %c96 = arith.constant 96 : index
    %90 = vector.load %arg9[%c0_18, %c96] : memref<20x256xf32, #tpu.memory_space<vmem>>, vector<20x32xf32>
    tpu.vector_store %arg9[%c0_18, %c96], %89 {strides = array<i32>} : memref<20x256xf32, #tpu.memory_space<vmem>>, vector<20x32xf32>,
    %91 = vector.extract_strided_slice %78 {offsets = [4, 0, 0], sizes = [1, 20, 32], strides = [1, 1, 1]} : vector<8x20x32xf32> to vector<1x20x32xf32>
    %92 = vector.shape_cast %91 : vector<1x20x32xf32> to vector<20x32xf32>
    %c0_19 = arith.constant 0 : index
    %c128 = arith.constant 128 : index
    %93 = vector.load %arg9[%c0_19, %c128] : memref<20x256xf32, #tpu.memory_space<vmem>>, vector<20x32xf32>
    tpu.vector_store %arg9[%c0_19, %c128], %92 {strides = array<i32>} : memref<20x256xf32, #tpu.memory_space<vmem>>, vector<20x32xf32>,
    %94 = vector.extract_strided_slice %78 {offsets = [5, 0, 0], sizes = [1, 20, 32], strides = [1, 1, 1]} : vector<8x20x32xf32> to vector<1x20x32xf32>
    %95 = vector.shape_cast %94 : vector<1x20x32xf32> to vector<20x32xf32>
    %c0_20 = arith.constant 0 : index
    %c160 = arith.constant 160 : index
    %96 = vector.load %arg9[%c0_20, %c160] : memref<20x256xf32, #tpu.memory_space<vmem>>, vector<20x32xf32>
    tpu.vector_store %arg9[%c0_20, %c160], %95 {strides = array<i32>} : memref<20x256xf32, #tpu.memory_space<vmem>>, vector<20x32xf32>,
    %97 = vector.extract_strided_slice %78 {offsets = [6, 0, 0], sizes = [1, 20, 32], strides = [1, 1, 1]} : vector<8x20x32xf32> to vector<1x20x32xf32>
    %98 = vector.shape_cast %97 : vector<1x20x32xf32> to vector<20x32xf32>
    %c0_21 = arith.constant 0 : index
    %c192 = arith.constant 192 : index
    %99 = vector.load %arg9[%c0_21, %c192] : memref<20x256xf32, #tpu.memory_space<vmem>>, vector<20x32xf32>
    tpu.vector_store %arg9[%c0_21, %c192], %98 {strides = array<i32>} : memref<20x256xf32, #tpu.memory_space<vmem>>, vector<20x32xf32>,
    %100 = vector.extract_strided_slice %78 {offsets = [7, 0, 0], sizes = [1, 20, 32], strides = [1, 1, 1]} : vector<8x20x32xf32> to vector<1x20x32xf32>
    %101 = vector.shape_cast %100 : vector<1x20x32xf32> to vector<20x32xf32>
    %c0_22 = arith.constant 0 : index
    %c224 = arith.constant 224 : index
    %102 = vector.load %arg9[%c0_22, %c224] : memref<20x256xf32, #tpu.memory_space<vmem>>, vector<20x32xf32>
    tpu.vector_store %arg9[%c0_22, %c224], %101 {strides = array<i32>} : memref<20x256xf32, #tpu.memory_space<vmem>>, vector<20x32xf32>,
    %c0_23 = arith.constant 0 : index
    %c0_24 = arith.constant 0 : index
    %103 = vector.load %arg9[%c0_23, %c0_24] : memref<20x256xf32, #tpu.memory_space<vmem>>, vector<20x256xf32>
    %104 = arith.truncf %103 : vector<20x256xf32> to vector<20x256xbf16>
    %c0_25 = arith.constant 0 : index
    %c0_26 = arith.constant 0 : index
    %105 = vector.load %arg5[%c0_25, %c0_26] : memref<256x256xbf16, #tpu.memory_space<vmem>>, vector<256x256xbf16>
    %cst_27 = arith.constant dense<0.000000e+00> : vector<20x256xf32>
    %106 = tpu.matmul %104, %105, %cst_27 {dimension_numbers = #tpu.dot_dimension_numbers<[1], [0], [0], [1], [0, 0, 1, 1], [], []>} : vector<20x256xbf16>, vector<256x256xbf16>, vector<20x256xf32> -> vector<20x256xf32>
    %c0_28 = arith.constant 0 : index
    %c0_29 = arith.constant 0 : index
    %107 = vector.load %arg6[%c0_28, %c0_29] : memref<1x256xf32, #tpu.memory_space<vmem>>, vector<1x256xf32>
    %108 = vector.broadcast %107 : vector<1x256xf32> to vector<20x256xf32>
    %109 = arith.addf %106, %108 : vector<20x256xf32>
    %c0_30 = arith.constant 0 : index
    %c0_31 = arith.constant 0 : index
    %110 = vector.load %arg8[%c0_30, %c0_31] : memref<20x256xf32, #tpu.memory_space<vmem>>, vector<20x256xf32>
    tpu.vector_store %arg8[%c0_30, %c0_31], %109 {strides = array<i32>} : memref<20x256xf32, #tpu.memory_space<vmem>>, vector<20x256xf32>,
    return
  }
  func.func @transform_0(%arg0: i32) -> (i32, i32) {
    %c0_i32 = arith.constant 0 : i32
    %c0_i32_0 = arith.constant 0 : i32
    %c0_i32_1 = arith.constant 0 : i32
    return %c0_i32, %c0_i32_0 : i32, i32
  }
  func.func @transform_1(%arg0: i32) -> (i32, i32) {
    %c0_i32 = arith.constant 0 : i32
    %c0_i32_0 = arith.constant 0 : i32
    %c0_i32_1 = arith.constant 0 : i32
    return %c0_i32, %c0_i32_0 : i32, i32
  }
  func.func @transform_2(%arg0: i32) -> (i32, i32) {
    %c0_i32 = arith.constant 0 : i32
    %c0_i32_0 = arith.constant 0 : i32
    %c0_i32_1 = arith.constant 0 : i32
    return %c0_i32, %c0_i32_0 : i32, i32
  }
  func.func @transform_3(%arg0: i32) -> (i32, i32) {
    %c0_i32 = arith.constant 0 : i32
    %c0_i32_0 = arith.constant 0 : i32
    %c0_i32_1 = arith.constant 0 : i32
    return %c0_i32, %c0_i32_0 : i32, i32
  }
  func.func @transform_4(%arg0: i32) -> (i32, i32) {
    %c0_i32 = arith.constant 0 : i32
    %c0_i32_0 = arith.constant 0 : i32
    %c0_i32_1 = arith.constant 0 : i32
    return %c0_i32, %c0_i32_0 : i32, i32
  }
  func.func @transform_5(%arg0: i32) -> (i32, i32) {
    %c0_i32 = arith.constant 0 : i32
    %c0_i32_0 = arith.constant 0 : i32
    %c0_i32_1 = arith.constant 0 : i32
    return %c0_i32, %c0_i32_0 : i32, i32
  }
  func.func @transform_6(%arg0: i32) -> (i32, i32) {
    %c0_i32 = arith.constant 0 : i32
    %c0_i32_0 = arith.constant 0 : i32
    %c0_i32_1 = arith.constant 0 : i32
    return %c0_i32, %c0_i32_0 : i32, i32
  }
  func.func @transform_7(%arg0: i32) -> (i32, i32) {
    %c0_i32 = arith.constant 0 : i32
    %c0_i32_0 = arith.constant 0 : i32
    %c0_i32_1 = arith.constant 0 : i32
    return %c0_i32, %c0_i32_0 : i32, i32
  }
}

</mosaic_0001>

<bundles_post_ra>
// kernel: tpu_custom_call.1
= control target key start
LH: loop header
LB: loop body
LE: loop exit
PB: predicated region body
PF: predicated region fallthrough
CT: control target
= control target key end

     0   :  { %12 = vsyncpa [#allocation4], 0  ;;  %s4430_s0 = inlined_call_operand.hbm [shape: bf16[20,256], index: 0, kind: input, shape index: {}]   ;;  %s4431_s1 = inlined_call_operand.hbm [shape: bf16[20,256], index: 1, kind: input, shape index: {}]   ;;  %s4432_s2 = inlined_call_operand.hbm [shape: bf16[256,256], index: 2, kind: input, shape index: {}]   ;;  %s4433_s3 = inlined_call_operand.hbm [shape: bf16[256,512], index: 3, kind: input, shape index: {}]   ;;  %s4434_s4 = inlined_call_operand.hbm [shape: bf16[256,256], index: 4, kind: input, shape index: {}]   ;;  %s4435_s5 = inlined_call_operand.vmem [shape: f32[1,256], index: 5, kind: input, shape index: {}]   ;;  %s4436_s6 = inlined_call_operand.hbm [shape: f32[20,20], index: 6, kind: input, shape index: {}]   ;;  %s4437_s7 = inlined_call_operand.hbm [shape: f32[20,256], index: 7, kind: output, shape index: {}]  }
   0x1   :  { %13 = vsyncpa [#allocation7], 0 }
   0x2   :  { %14 = vsyncpa [#allocation10], 0 }
   0x3   :  { %15 = vsyncpa [#allocation13], 0 }
   0x4   :  { %16 = vsyncpa [#allocation5], 0  ;;  %s3718_s24 = smov [#allocation6]   ;;  %s3719_s26 = smov [#allocation9]  }
   0x5   :  { %s34_s25 = sshll.u32 %s3718_s24, 4  ;;  %s58_s27 = sshll.u32 %s3719_s26, 4  ;;  %s35_s25 = int_to_ptr.vmem [resolvable:$true] %s34_s25  ;;  %s3772_s27 = int_to_ptr.vmem [resolvable:$true] %s58_s27 }
   0x6   :  { %s3554_s30 = scalar_lea.hbm %s4431_s1, 384 }
   0x7   :  { %p3555_p0 = scmp.ne.s32.totalorder %s4431_s1, %s3554_s30  ;;  %p3558_p1 = scmp.lt.u32.totalorder %s3554_s30, %s4431_s1 }
   0x9   :  { %p3560_p2 = pnand %p3558_p1, %p3555_p0 }
   0xb   :  { %3563 = shalt.err (!%p3560_p2)
}
   0xc   :  { %s3564_s12 = scalar_lea.vmem %s35_s25, 384  ;;  %p3569_p4 = scmp.lt.s32.totalorder %s35_s25, %s35_s25 }
   0xd   :  { %p3565_p3 = scmp.ne.s32.totalorder %s35_s25, %s3564_s12  ;;  %p3570_p5 = scmp.lt.s32.totalorder %s3564_s12, %s3564_s12 }
   0xf   :  { %p3571_p6 = por %p3570_p5, %p3569_p4 }
  0x11   :  { %p3572_p7 = pnand %p3571_p6, %p3565_p3 }
  0x13   :  { %3575 = shalt.err (!%p3572_p7)
}
  0x14   :  { %s3720_s13 = smov 128   ;;  %s3721_s14 = smov 8  }
  0x15   :  { %40 = dma.hbm_to_vmem [thread:$0]  %s4431_s1, 384, %s35_s25, [#allocation7], %s3720_s13, %s3720_s13, %s3721_s14  }
  0x16   :  { %s3576_s19 = scalar_lea.hbm %s4433_s3, 8192 }
  0x17   :  { %p3577_p8 = scmp.ne.s32.totalorder %s4433_s3, %s3576_s19  ;;  %p3580_p9 = scmp.lt.u32.totalorder %s3576_s19, %s4433_s3 }
  0x19   :  { %p3582_p10 = pnand %p3580_p9, %p3577_p8 }
  0x1b   :  { %3585 = shalt.err (!%p3582_p10)
}
  0x1c   :  { %s3586_s24 = scalar_lea.vmem %s3772_s27, 8192  ;;  %p3591_p12 = scmp.lt.s32.totalorder %s3772_s27, %s3772_s27 }
  0x1d   :  { %p3587_p11 = scmp.ne.s32.totalorder %s3772_s27, %s3586_s24  ;;  %p3592_p13 = scmp.lt.s32.totalorder %s3586_s24, %s3586_s24 }
  0x1f   :  { %p3593_p0 = por %p3592_p13, %p3591_p12 }
  0x21   :  { %p3594_p1 = pnand %p3593_p0, %p3587_p11 }
  0x23   :  { %3597 = shalt.err (!%p3594_p1)
}
  0x24   :  { %s3722_s1 = smov 256   ;;  %s3723_s25 = smov 16  }
  0x25   :  { %64 = dma.hbm_to_vmem [thread:$0]  %s4433_s3, 8192, %s3772_s27, [#allocation10], %s3722_s1, %s3722_s1, %s3723_s25  }
  0x26   :  { %s3724_s29 = smov [#allocation3]   ;;  %s3725_s8 = smov [#allocation8]  }
  0x27   :  { %s22_s30 = sshll.u32 %s3724_s29, 4  ;;  %s46_s9 = sshll.u32 %s3725_s8, 4  ;;  %s23_s30 = int_to_ptr.vmem [resolvable:$true] %s22_s30  ;;  %s3809_s9 = int_to_ptr.vmem [resolvable:$true] %s46_s9 }
  0x28   :  { %s3598_s12 = scalar_lea.hbm %s4430_s0, 384 }
  0x29   :  { %p3599_p2 = scmp.ne.s32.totalorder %s4430_s0, %s3598_s12  ;;  %p3602_p3 = scmp.lt.u32.totalorder %s3598_s12, %s4430_s0 }
  0x2b   :  { %p3604_p4 = pnand %p3602_p3, %p3599_p2 }
  0x2d   :  { %3607 = shalt.err (!%p3604_p4)
}
  0x2e   :  { %s3608_s3 = scalar_lea.vmem %s23_s30, 384  ;;  %p3613_p6 = scmp.lt.s32.totalorder %s23_s30, %s23_s30 }
  0x2f   :  { %p3609_p5 = scmp.ne.s32.totalorder %s23_s30, %s3608_s3  ;;  %p3614_p7 = scmp.lt.s32.totalorder %s3608_s3, %s3608_s3 }
  0x31   :  { %p3615_p8 = por %p3614_p7, %p3613_p6 }
  0x33   :  { %p3616_p9 = pnand %p3615_p8, %p3609_p5 }
  0x35   :  { %3619 = shalt.err (!%p3616_p9)
}
  0x36   :  { %28 = dma.hbm_to_vmem [thread:$0]  %s4430_s0, 384, %s23_s30, [#allocation4], %s3720_s13, %s3720_s13, %s3721_s14  }
  0x37   :  { %s3620_s22 = scalar_lea.hbm %s4432_s2, 4096 }
  0x38   :  { %p3621_p10 = scmp.ne.s32.totalorder %s4432_s2, %s3620_s22  ;;  %p3624_p11 = scmp.lt.u32.totalorder %s3620_s22, %s4432_s2 }
  0x3a   :  { %p3626_p12 = pnand %p3624_p11, %p3621_p10 }
  0x3c   :  { %3629 = shalt.err (!%p3626_p12)
}
  0x3d   :  { %s3630_s29 = scalar_lea.vmem %s3809_s9, 4096  ;;  %p3635_p0 = scmp.lt.s32.totalorder %s3809_s9, %s3809_s9 }
  0x3e   :  { %p3631_p13 = scmp.ne.s32.totalorder %s3809_s9, %s3630_s29  ;;  %p3636_p1 = scmp.lt.s32.totalorder %s3630_s29, %s3630_s29 }
  0x40   :  { %p3637_p2 = por %p3636_p1, %p3635_p0 }
  0x42   :  { %p3638_p3 = pnand %p3637_p2, %p3631_p13 }
  0x44   :  { %3641 = shalt.err (!%p3638_p3)
}
  0x45   :  { %52 = dma.hbm_to_vmem [thread:$0]  %s4432_s2, 4096, %s3809_s9, [#allocation7], %s3720_s13, %s3720_s13, %s3721_s14  }
  0x46   :  { %s3726_s8 = smov [#allocation11]   ;;  %s3727_s11 = smov [#allocation12]  }
  0x47   :  { %s70_s10 = sshll.u32 %s3726_s8, 4  ;;  %s84_s12 = sshll.u32 %s3727_s11, 4  ;;  %s71_s10 = int_to_ptr.vmem [resolvable:$true] %s70_s10  ;;  %s3846_s12 = int_to_ptr.vmem [resolvable:$true] %s84_s12 }
  0x48   :  { %s3642_s17 = scalar_lea.hbm %s4434_s4, 4096 }
  0x49   :  { %p3643_p4 = scmp.ne.s32.totalorder %s4434_s4, %s3642_s17  ;;  %p3646_p5 = scmp.lt.u32.totalorder %s3642_s17, %s4434_s4 }
  0x4b   :  { %p3648_p6 = pnand %p3646_p5, %p3643_p4 }
  0x4d   :  { %3651 = shalt.err (!%p3648_p6)
}
  0x4e   :  { %s3652_s2 = scalar_lea.vmem %s71_s10, 4096  ;;  %p3657_p8 = scmp.lt.s32.totalorder %s71_s10, %s71_s10 }
  0x4f   :  { %p3653_p7 = scmp.ne.s32.totalorder %s71_s10, %s3652_s2  ;;  %p3658_p9 = scmp.lt.s32.totalorder %s3652_s2, %s3652_s2 }
  0x51   :  { %p3659_p10 = por %p3658_p9, %p3657_p8 }
  0x53   :  { %p3660_p11 = pnand %p3659_p10, %p3653_p7 }
  0x55   :  { %3663 = shalt.err (!%p3660_p11)
}
  0x56   :  { %76 = dma.hbm_to_vmem [thread:$0]  %s4434_s4, 4096, %s71_s10, [#allocation10], %s3720_s13, %s3720_s13, %s3721_s14  }
  0x57   :  { %s3664_s23 = scalar_lea.hbm %s4436_s6, 384 }
  0x58   :  { %p3665_p12 = scmp.ne.s32.totalorder %s4436_s6, %s3664_s23  ;;  %p3668_p13 = scmp.lt.u32.totalorder %s3664_s23, %s4436_s6 }
  0x5a   :  { %p3670_p0 = pnand %p3668_p13, %p3665_p12 }
  0x5c   :  { %3673 = shalt.err (!%p3670_p0)
}
  0x5d   :  { %s3674_s0 = scalar_lea.vmem %s3846_s12, 384  ;;  %p3679_p2 = scmp.lt.s32.totalorder %s3846_s12, %s3846_s12 }
  0x5e   :  { %p3675_p1 = scmp.ne.s32.totalorder %s3846_s12, %s3674_s0  ;;  %p3680_p3 = scmp.lt.s32.totalorder %s3674_s0, %s3674_s0 }
  0x60   :  { %p3681_p4 = por %p3680_p3, %p3679_p2 }
  0x62   :  { %p3682_p5 = pnand %p3681_p4, %p3675_p1 }
  0x64   :  { %3685 = shalt.err (!%p3682_p5)
}
  0x65   :  { %90 = dma.hbm_to_vmem [thread:$0]  %s4436_s6, 384, %s3846_s12, [#allocation13], %s3720_s13, %s3720_s13, %s3721_s14  }
  0x66   :  { %3708 = dma.done.wait [#allocation4], 384  }
  0x67   :  { %3709 = vsyncadd [#allocation4], 4294966912 }
  0x68   :  { %3710 = dma.done.wait [#allocation7], 4480  }
  0x69   :  { %3711 = vsyncadd [#allocation7], 4294962816 }
  0x6a   :  { %3712 = dma.done.wait [#allocation10], 12288  }
  0x6b   :  { %3713 = vsyncadd [#allocation10], 4294955008 }
  0x6c   :  { %3714 = dma.done.wait [#allocation13], 384  }
  0x6d   :  { %3715 = vsyncadd [#allocation13], 4294966912  ;;  %v3256_v0 = vld [vmem:[#allocation8 + $0x4] ss:$8 sps:$4 sm:$0xff]   ;;  %v3260_v2 = vld [vmem:[#allocation8] ss:$8 sps:$4 sm:$0xff]  }
  0x6e   :  { %v3258_v1 = vld [vmem:[#allocation9 + $0x4] ss:$16 sps:$4 sm:$0xff]   ;;  %322 = vmatprep.subr.bf16.mxu0 %v3256_v0  ;;  %v3261_v3 = vld [vmem:[#allocation9] ss:$16 sps:$4 sm:$0xff]   ;;  %vm1107_vm0 = vcmask 261120   ;;  %s3728_s6 = smov 96  }
  0x6f   :  { %777 = vmatprep.subr.bf16.mxu1 %v3258_v1  ;;  %v3262_v4 = vld [vmem:[#allocation8 + $0x14] ss:$8 sps:$4 sm:$0xff]   ;;  %323 = vmatpush1.bf16.msra.mxu0 %v3260_v2  ;;  %v3266_v6 = vld [vmem:[#allocation8 + $0x10] ss:$8 sps:$4 sm:$0xff]   ;;  %v3268_v8 = vld [vmem:[#allocation8 + $0x24] ss:$8 sps:$4 sm:$0xff]  }
  0x70   :  { %778 = vmatpush1.bf16.msra.mxu1 %v3261_v3  ;;  %v3264_v5 = vld [vmem:[#allocation9 + $0x24] ss:$16 sps:$4 sm:$0xff]   ;;  %324 = vmatprep.subr.bf16.mxu0 %v3262_v4  ;;  %v3267_v7 = vld [vmem:[#allocation9 + $0x20] ss:$16 sps:$4 sm:$0xff]   ;;  %v375_v3 = vld [vmem:[#allocation6 + $0x10] sm:$0x33] }
  0x71   :  { %779 = vmatprep.subr.bf16.mxu1 %v3264_v5  ;;  %v3270_v9 = vld [vmem:[#allocation9 + $0x44] ss:$16 sps:$4 sm:$0xff]   ;;  %v3272_v10 = vld [vmem:[#allocation8 + $0x20] ss:$8 sps:$4 sm:$0xff]   ;;  %v3278_v14 = vld [vmem:[#allocation8 + $0x30] ss:$8 sps:$4 sm:$0xff]  }
  0x72   :  { %v3273_v11 = vld [vmem:[#allocation9 + $0x40] ss:$16 sps:$4 sm:$0xff]   ;;  %v3274_v12 = vld [vmem:[#allocation8 + $0x34] ss:$8 sps:$4 sm:$0xff]   ;;  %v3280_v16 = vld [vmem:[#allocation8 + $0x44] ss:$8 sps:$4 sm:$0xff]  }
  0x73   :  { %325 = vmatpush1.bf16.msra.mxu0 %v3266_v6  ;;  %v3276_v13 = vld [vmem:[#allocation9 + $0x64] ss:$16 sps:$4 sm:$0xff]   ;;  %v3279_v15 = vld [vmem:[#allocation9 + $0x60] ss:$16 sps:$4 sm:$0xff]   ;;  %v3364_v4 = vld [vmem:[#allocation9 + $0xc] ss:$16 sps:$4 sm:$0xff]  }
  0x74   :  { %780 = vmatpush1.bf16.msra.mxu1 %v3267_v7  ;;  %326 = vmatprep.subr.bf16.mxu0 %v3268_v8  ;;  %v3282_v17 = vld [vmem:[#allocation9 + $0x84] ss:$16 sps:$4 sm:$0xff]   ;;  %v3284_v18 = vld [vmem:[#allocation8 + $0x40] ss:$8 sps:$4 sm:$0xff]   ;;  %v3290_v22 = vld [vmem:[#allocation8 + $0x50] ss:$8 sps:$4 sm:$0xff]   ;;  %v3885_v8 = vcombine.high %v375_v3, %v375_v3 }
  0x75   :  { %781 = vmatprep.subr.bf16.mxu1 %v3270_v9  ;;  %v3285_v19 = vld [vmem:[#allocation9 + $0x80] ss:$16 sps:$4 sm:$0xff]   ;;  %v3286_v20 = vld [vmem:[#allocation8 + $0x54] ss:$8 sps:$4 sm:$0xff]   ;;  %v3292_v24 = vld [vmem:[#allocation8 + $0x64] ss:$8 sps:$4 sm:$0xff]  }
  0x76   :  { %v3288_v21 = vld [vmem:[#allocation9 + $0xa4] ss:$16 sps:$4 sm:$0xff]   ;;  %v3291_v23 = vld [vmem:[#allocation9 + $0xa0] ss:$16 sps:$4 sm:$0xff]   ;;  %v3362_v9 = vld [vmem:[#allocation9 + $0x8] ss:$16 sps:$4 sm:$0xff]  }
  0x77   :  { %327 = vmatpush1.bf16.msra.mxu0 %v3272_v10  ;;  %v3294_v25 = vld [vmem:[#allocation9 + $0xc4] ss:$16 sps:$4 sm:$0xff]   ;;  %v3296_v26 = vld [vmem:[#allocation8 + $0x60] ss:$8 sps:$4 sm:$0xff]   ;;  %v3302_v30 = vld [vmem:[#allocation8 + $0x70] ss:$8 sps:$4 sm:$0xff]  }
  0x78   :  { %782 = vmatpush1.bf16.msra.mxu1 %v3273_v11  ;;  %328 = vmatprep.subr.bf16.mxu0 %v3274_v12  ;;  %v3297_v27 = vld [vmem:[#allocation9 + $0xc0] ss:$16 sps:$4 sm:$0xff]   ;;  %v3298_v28 = vld [vmem:[#allocation8 + $0x74] ss:$8 sps:$4 sm:$0xff]   ;;  %v3304_v32 = vld [vmem:[#allocation8 + $0x84] ss:$8 sps:$4 sm:$0xff]  }
  0x79   :  { %783 = vmatprep.subr.bf16.mxu1 %v3276_v13  ;;  %v3300_v29 = vld [vmem:[#allocation9 + $0xe4] ss:$16 sps:$4 sm:$0xff]   ;;  %v3303_v31 = vld [vmem:[#allocation9 + $0xe0] ss:$16 sps:$4 sm:$0xff]   ;;  %v3367_v10 = vld [vmem:[#allocation9 + $0x2c] ss:$16 sps:$4 sm:$0xff]  }
  0x7a   :  { %v3306_v33 = vld [vmem:[#allocation9 + $0x104] ss:$16 sps:$4 sm:$0xff]   ;;  %v3308_v34 = vld [vmem:[#allocation8 + $0x80] ss:$8 sps:$4 sm:$0xff]   ;;  %v3314_v38 = vld [vmem:[#allocation8 + $0x90] ss:$8 sps:$4 sm:$0xff]  }
  0x7b   :  { %329 = vmatpush1.bf16.msra.mxu0 %v3278_v14  ;;  %v3309_v35 = vld [vmem:[#allocation9 + $0x100] ss:$16 sps:$4 sm:$0xff]   ;;  %v3310_v36 = vld [vmem:[#allocation8 + $0x94] ss:$8 sps:$4 sm:$0xff]   ;;  %v3316_v40 = vld [vmem:[#allocation8 + $0xa4] ss:$8 sps:$4 sm:$0xff]   ;;  %v2786_v14 = vcombine.low %v375_v3, %v375_v3 }
  0x7c   :  { %784 = vmatpush1.bf16.msra.mxu1 %v3279_v15  ;;  %330 = vmatprep.subr.bf16.mxu0 %v3280_v16  ;;  %v3312_v37 = vld [vmem:[#allocation9 + $0x124] ss:$16 sps:$4 sm:$0xff]   ;;  %v3315_v39 = vld [vmem:[#allocation9 + $0x120] ss:$16 sps:$4 sm:$0xff]   ;;  %v3365_v11 = vld [vmem:[#allocation9 + $0x28] ss:$16 sps:$4 sm:$0xff]  }
  0x7d   :  { %785 = vmatprep.subr.bf16.mxu1 %v3282_v17  ;;  %v3318_v41 = vld [vmem:[#allocation9 + $0x144] ss:$16 sps:$4 sm:$0xff]   ;;  %v3320_v42 = vld [vmem:[#allocation8 + $0xa0] ss:$8 sps:$4 sm:$0xff]   ;;  %v3326_v46 = vld [vmem:[#allocation8 + $0xb0] ss:$8 sps:$4 sm:$0xff]  }
  0x7e   :  { %v3321_v43 = vld [vmem:[#allocation9 + $0x140] ss:$16 sps:$4 sm:$0xff]   ;;  %v3322_v44 = vld [vmem:[#allocation8 + $0xb4] ss:$8 sps:$4 sm:$0xff]   ;;  %v3328_v49 = vld [vmem:[#allocation8 + $0xc4] ss:$8 sps:$4 sm:$0xff]  }
  0x7f   :  { %331 = vmatpush1.bf16.msra.mxu0 %v3284_v18  ;;  %v3324_v45 = vld [vmem:[#allocation9 + $0x164] ss:$16 sps:$4 sm:$0xff]   ;;  %v3327_v48 = vld [vmem:[#allocation9 + $0x160] ss:$16 sps:$4 sm:$0xff]   ;;  %v3370_v12 = vld [vmem:[#allocation9 + $0x4c] ss:$16 sps:$4 sm:$0xff]  }
  0x80   :  { %786 = vmatpush1.bf16.msra.mxu1 %v3285_v19  ;;  %332 = vmatprep.subr.bf16.mxu0 %v3286_v20  ;;  %v3354_v47 = vld [vmem:[#allocation3 + $0x4] ss:$8 sps:$4 sm:$0xff]   ;;  %v3332_v52 = vld [vmem:[#allocation8 + $0xc0] ss:$8 sps:$4 sm:$0xff]   ;;  %v3338_v56 = vld [vmem:[#allocation8 + $0xd0] ss:$8 sps:$4 sm:$0xff]  }
  0x81   :  { %787 = vmatprep.subr.bf16.mxu1 %v3288_v21  ;;  %v3330_v50 = vld [vmem:[#allocation9 + $0x184] ss:$16 sps:$4 sm:$0xff]   ;;  %354 = vmatprep.mubr.bf16.mxu0 %v3354_v47  ;;  %v3333_v53 = vld [vmem:[#allocation9 + $0x180] ss:$16 sps:$4 sm:$0xff]   ;;  %v3368_v15 = vld [vmem:[#allocation9 + $0x48] ss:$16 sps:$4 sm:$0xff]  }
  0x82   :  { %v3357_v51 = vld [vmem:[#allocation6 + $0x4] ss:$8 sps:$4 sm:$0xff]   ;;  %v3339_v57 = vld [vmem:[#allocation9 + $0x1a0] ss:$16 sps:$4 sm:$0xff]   ;;  %v3371_v17 = vld [vmem:[#allocation9 + $0x68] ss:$16 sps:$4 sm:$0xff]  }
  0x83   :  { %333 = vmatpush1.bf16.msra.mxu0 %v3290_v22  ;;  %809 = vmatprep.mubr.bf16.mxu1 %v3357_v51  ;;  %v3334_v54 = vld [vmem:[#allocation8 + $0xd4] ss:$8 sps:$4 sm:$0xff]   ;;  %v3340_v58 = vld [vmem:[#allocation8 + $0xe4] ss:$8 sps:$4 sm:$0xff]   ;;  %v3344_v60 = vld [vmem:[#allocation8 + $0xe0] ss:$8 sps:$4 sm:$0xff]  }
  0x84   :  { %788 = vmatpush1.bf16.msra.mxu1 %v3291_v23  ;;  %334 = vmatprep.subr.bf16.mxu0 %v3292_v24  ;;  %v3336_v55 = vld [vmem:[#allocation9 + $0x1a4] ss:$16 sps:$4 sm:$0xff]   ;;  %v3345_v61 = vld [vmem:[#allocation9 + $0x1c0] ss:$16 sps:$4 sm:$0xff]   ;;  %v3373_v16 = vld [vmem:[#allocation9 + $0x6c] ss:$16 sps:$4 sm:$0xff]  }
  0x85   :  { %789 = vmatprep.subr.bf16.mxu1 %v3294_v25  ;;  %v3342_v59 = vld [vmem:[#allocation9 + $0x1c4] ss:$16 sps:$4 sm:$0xff]   ;;  %v3350_v0 = vld [vmem:[#allocation8 + $0xf0] ss:$8 sps:$4 sm:$0xff]   ;;  %v3376_v18 = vld [vmem:[#allocation9 + $0x8c] ss:$16 sps:$4 sm:$0xff]  }
  0x86   :  { %v3346_v62 = vld [vmem:[#allocation8 + $0xf4] ss:$8 sps:$4 sm:$0xff]   ;;  %v3351_v1 = vld [vmem:[#allocation9 + $0x1e0] ss:$16 sps:$4 sm:$0xff]   ;;  %v3374_v19 = vld [vmem:[#allocation9 + $0x88] ss:$16 sps:$4 sm:$0xff]  }
  0x87   :  { %335 = vmatpush1.bf16.msra.mxu0 %v3296_v26  ;;  %v3348_v63 = vld [vmem:[#allocation9 + $0x1e4] ss:$16 sps:$4 sm:$0xff]   ;;  %v3352_v5 = vld [vmem:[#allocation3] ss:$8 sps:$4 sm:$0xff]   ;;  %v3379_v20 = vld [vmem:[#allocation9 + $0xac] ss:$16 sps:$4 sm:$0xff]  }
  0x88   :  { %790 = vmatpush1.bf16.msra.mxu1 %v3297_v27  ;;  %336 = vmatprep.subr.bf16.mxu0 %v3298_v28  ;;  %v112_v2 = vld [vmem:[#allocation3 + $0x10] sm:$0x33]  ;;  %v3883_v6 = vld [vmem:[#allocation6] ss:$8 sps:$4 sm:$0xff]   ;;  %v3382_v22 = vld [vmem:[#allocation9 + $0xcc] ss:$16 sps:$4 sm:$0xff]  }
  0x89   :  { %791 = vmatprep.subr.bf16.mxu1 %v3300_v29  ;;  %v2751_v7 = vcombine.high %v112_v2, %v112_v2  ;;  %v2750_v13 = vcombine.low %v112_v2, %v112_v2  ;;  %v3377_v21 = vld [vmem:[#allocation9 + $0xa8] ss:$16 sps:$4 sm:$0xff]   ;;  %v3385_v24 = vld [vmem:[#allocation9 + $0xec] ss:$16 sps:$4 sm:$0xff]   ;;  %s3729_s13 = smov 64   ;;  %s3730_s14 = smov 32  }
  0x8a   :  { %v3380_v23 = vld [vmem:[#allocation9 + $0xc8] ss:$16 sps:$4 sm:$0xff]   ;;  %v3388_v26 = vld [vmem:[#allocation9 + $0x10c] ss:$16 sps:$4 sm:$0xff]   ;;  %vm1903_vm1 = vcmask 1041408   ;;  %vm1595_vm2 = vcmask 158720  }
  0x8b   :  { %337 = vmatpush1.bf16.msra.mxu0 %v3302_v30  ;;  %v3383_v25 = vld [vmem:[#allocation9 + $0xe8] ss:$16 sps:$4 sm:$0xff]   ;;  %v3391_v28 = vld [vmem:[#allocation9 + $0x12c] ss:$16 sps:$4 sm:$0xff]   ;;  %vm1588_vm3 = vcmask 162816   ;;  %vm2356_vm4 = vcmask 257024  }
  0x8c   :  { %792 = vmatpush1.bf16.msra.mxu1 %v3303_v31  ;;  %338 = vmatprep.subr.bf16.mxu0 %v3304_v32  ;;  %v3386_v27 = vld [vmem:[#allocation9 + $0x108] ss:$16 sps:$4 sm:$0xff]   ;;  %v3394_v30 = vld [vmem:[#allocation9 + $0x14c] ss:$16 sps:$4 sm:$0xff]   ;;  %vm2370_vm5 = vcmask 523520   ;;  %vm2387_vm6 = vcmask 785920  }
  0x8d   :  { %793 = vmatprep.subr.bf16.mxu1 %v3306_v33  ;;  %v3389_v29 = vld [vmem:[#allocation9 + $0x128] ss:$16 sps:$4 sm:$0xff]   ;;  %v3397_v32 = vld [vmem:[#allocation9 + $0x16c] ss:$16 sps:$4 sm:$0xff]   ;;  %vm2404_vm7 = vcmask 1048320   ;;  %vm2373_vm8 = vcmask 519424  }
  0x8e   :  { %v3392_v31 = vld [vmem:[#allocation9 + $0x148] ss:$16 sps:$4 sm:$0xff]   ;;  %vm2390_vm9 = vcmask 781824   ;;  %vm2407_vm10 = vcmask 1044224   ;;  %s3731_s11 = smov [#allocation14]  }
  0x8f   :  { %339 = vmatpush1.bf16.msra.mxu0 %v3308_v34  ;;  %v3395_v33 = vld [vmem:[#allocation9 + $0x168] ss:$16 sps:$4 sm:$0xff]   ;;  %v3400_v34 = vld [vmem:[#allocation9 + $0x18c] ss:$16 sps:$4 sm:$0xff]   ;;  %s2733_s12 = sshll.u32 %s3731_s11, 4  ;;  %s2734_s12 = int_to_ptr.vmem [resolvable:$true] %s2733_s12 }
  0x90   :  { %794 = vmatpush1.bf16.msra.mxu1 %v3309_v35  ;;  %340 = vmatprep.subr.bf16.mxu0 %v3310_v36  ;;  %v3398_v35 = vld [vmem:[#allocation9 + $0x188] ss:$16 sps:$4 sm:$0xff]   ;;  %v3403_v36 = vld [vmem:[#allocation9 + $0x1ac] ss:$16 sps:$4 sm:$0xff]   ;;  %p3691_p7 = scmp.lt.s32.totalorder %s2734_s12, %s2734_s12 }
  0x91   :  { %795 = vmatprep.subr.bf16.mxu1 %v3312_v37  ;;  %v3401_v37 = vld [vmem:[#allocation9 + $0x1a8] ss:$16 sps:$4 sm:$0xff]  }
  0x93   :  { %341 = vmatpush1.bf16.msra.mxu0 %v3314_v38  ;;  %v3406_v38 = vld [vmem:[#allocation9 + $0x1cc] ss:$16 sps:$4 sm:$0xff]  }
  0x94   :  { %796 = vmatpush1.bf16.msra.mxu1 %v3315_v39  ;;  %342 = vmatprep.subr.bf16.mxu0 %v3316_v40  ;;  %v3404_v39 = vld [vmem:[#allocation9 + $0x1c8] ss:$16 sps:$4 sm:$0xff]   ;;  %v3409_v40 = vld [vmem:[#allocation9 + $0x1ec] ss:$16 sps:$4 sm:$0xff]  }
  0x95   :  { %797 = vmatprep.subr.bf16.mxu1 %v3318_v41  ;;  %v3407_v41 = vld [vmem:[#allocation9 + $0x1e8] ss:$16 sps:$4 sm:$0xff]  }
  0x97   :  { %343 = vmatpush1.bf16.msra.mxu0 %v3320_v42 }
  0x98   :  { %798 = vmatpush1.bf16.msra.mxu1 %v3321_v43  ;;  %344 = vmatprep.subr.bf16.mxu0 %v3322_v44 }
  0x99   :  { %799 = vmatprep.subr.bf16.mxu1 %v3324_v45 }
  0x9b   :  { %345 = vmatpush1.bf16.msra.mxu0 %v3326_v46 }
  0x9c   :  { %800 = vmatpush1.bf16.msra.mxu1 %v3327_v48  ;;  %346 = vmatprep.subr.bf16.mxu0 %v3328_v49 }
  0x9d   :  { %801 = vmatprep.subr.bf16.mxu1 %v3330_v50 }
  0x9f   :  { %347 = vmatpush1.bf16.msra.mxu0 %v3332_v52 }
  0xa0   :  { %802 = vmatpush1.bf16.msra.mxu1 %v3333_v53  ;;  %348 = vmatprep.subr.bf16.mxu0 %v3334_v54 }
  0xa1   :  { %803 = vmatprep.subr.bf16.mxu1 %v3336_v55 }
  0xa3   :  { %349 = vmatpush1.bf16.msra.mxu0 %v3338_v56 }
  0xa4   :  { %804 = vmatpush1.bf16.msra.mxu1 %v3339_v57  ;;  %350 = vmatprep.subr.bf16.mxu0 %v3340_v58 }
  0xa5   :  { %805 = vmatprep.subr.bf16.mxu1 %v3342_v59 }
  0xa7   :  { %351 = vmatpush1.bf16.msra.mxu0 %v3344_v60 }
  0xa8   :  { %806 = vmatpush1.bf16.msra.mxu1 %v3345_v61  ;;  %352 = vmatprep.subr.bf16.mxu0 %v3346_v62 }
  0xa9   :  { %807 = vmatprep.subr.bf16.mxu1 %v3348_v63 }
  0xab   :  { %353 = vmatpush1.bf16.msra.mxu0 %v3350_v0 }
  0xac   :  { %808 = vmatpush1.bf16.msra.mxu1 %v3351_v1  ;;  %828 = vmatprep.subr.bf16.mxu0 %v3364_v4 }
  0xae   :  { %355 = vmatmul.mubr.bf16.vlgmr.msra.gmra.mrb[0].mxu0 %v3352_v5 }
  0xaf   :  { %810 = vmatmul.mubr.bf16.vlgmr.msra.gmra.mrb[0].mxu1 %v3883_v6  ;;  %364 = vmatprep.mubr.bf16.mxu0 %v2751_v7 }
  0xb0   :  { %819 = vmatprep.mubr.bf16.mxu1 %v3885_v8  ;;  %829 = vmatpush1.bf16.msra.mxu0 %v3362_v9 }
  0xb1   :  { %830 = vmatprep.subr.bf16.mxu0 %v3367_v10 }
  0xb4   :  { %831 = vmatpush1.bf16.msra.mxu0 %v3365_v11 }
  0xb5   :  { %832 = vmatprep.subr.bf16.mxu0 %v3370_v12 }
  0xb6   :  { %365 = vmatmul.mubr.bf16.gmra.mrb[4].mxu0 %v2750_v13 }
  0xb7   :  { %820 = vmatmul.mubr.bf16.gmra.mrb[4].mxu1 %v2786_v14  ;;  %860 = vmatprep.mubr.bf16.mxu0 %v3357_v51 }
  0xb8   :  { %833 = vmatpush1.bf16.msra.mxu0 %v3368_v15 }
  0xb9   :  { %834 = vmatprep.subr.bf16.mxu0 %v3373_v16 }
  0xbc   :  { %835 = vmatpush1.bf16.msra.mxu0 %v3371_v17 }
  0xbd   :  { %836 = vmatprep.subr.bf16.mxu0 %v3376_v18 }
  0xc0   :  { %837 = vmatpush1.bf16.msra.mxu0 %v3374_v19 }
  0xc1   :  { %838 = vmatprep.subr.bf16.mxu0 %v3379_v20 }
  0xc4   :  { %839 = vmatpush1.bf16.msra.mxu0 %v3377_v21 }
  0xc5   :  { %840 = vmatprep.subr.bf16.mxu0 %v3382_v22 }
  0xc8   :  { %841 = vmatpush1.bf16.msra.mxu0 %v3380_v23 }
  0xc9   :  { %842 = vmatprep.subr.bf16.mxu0 %v3385_v24 }
  0xcc   :  { %843 = vmatpush1.bf16.msra.mxu0 %v3383_v25 }
  0xcd   :  { %844 = vmatprep.subr.bf16.mxu0 %v3388_v26 }
  0xd0   :  { %845 = vmatpush1.bf16.msra.mxu0 %v3386_v27 }
  0xd1   :  { %846 = vmatprep.subr.bf16.mxu0 %v3391_v28 }
  0xd4   :  { %847 = vmatpush1.bf16.msra.mxu0 %v3389_v29 }
  0xd5   :  { %848 = vmatprep.subr.bf16.mxu0 %v3394_v30 }
  0xd8   :  { %849 = vmatpush1.bf16.msra.mxu0 %v3392_v31 }
  0xd9   :  { %850 = vmatprep.subr.bf16.mxu0 %v3397_v32 }
  0xdc   :  { %851 = vmatpush1.bf16.msra.mxu0 %v3395_v33 }
  0xdd   :  { %852 = vmatprep.subr.bf16.mxu0 %v3400_v34 }
  0xe0   :  { %853 = vmatpush1.bf16.msra.mxu0 %v3398_v35 }
  0xe1   :  { %854 = vmatprep.subr.bf16.mxu0 %v3403_v36 }
  0xe4   :  { %855 = vmatpush1.bf16.msra.mxu0 %v3401_v37 }
  0xe5   :  { %856 = vmatprep.subr.bf16.mxu0 %v3406_v38 }
  0xe8   :  { %857 = vmatpush1.bf16.msra.mxu0 %v3404_v39 }
  0xe9   :  { %858 = vmatprep.subr.bf16.mxu0 %v3409_v40 }
  0xec   :  { %859 = vmatpush1.bf16.msra.mxu0 %v3407_v41 }
  0xef   :  { %861 = vmatmul.mubr.bf16.vlgmr.msra.gmra.mrb[8].mxu0 %v3883_v6 }
  0xf0   :  { %870 = vmatprep.mubr.bf16.mxu0 %v3885_v8 }
  0xf7   :  { %871 = vmatmul.mubr.bf16.gmra.mrb[12].mxu0 %v2786_v14 }
 0x181   :  { %v356_v43 = vpop.f32.mrb[0].mxu0 }
 0x182   :  { %v811_v42 = vpop.f32.mrb[0].mxu1  ;;  %v3891_v45 = vpop.f32.mrb[1].mxu0 }
 0x183   :  { %v813_v44 = vpop.f32.mrb[1].mxu1  ;;  %v360_v47 = vpop.f32.mrb[2].mxu0 }
 0x184   :  { %v815_v46 = vpop.f32.mrb[2].mxu1  ;;  %v939_v51 = vpack.c.bf16 %v360_v47, %v356_v43  ;;  %v3893_v52 = vpop.f32.mrb[3].mxu0  ;;  %v3181_v55 = vpack.i.bf16 %v360_v47, %v356_v43 }
 0x185   :  { %v1015_v48 = vpack.c.bf16 %v815_v46, %v811_v42  ;;  %v817_v49 = vpop.f32.mrb[3].mxu1  ;;  %v3146_v50 = vpack.i.bf16 %v815_v46, %v811_v42  ;;  %v947_v54 = vpack.c.bf16 %v3893_v52, %v3891_v45  ;;  %v3221_v58 = vpack.i.bf16 %v3893_v52, %v3891_v45 }
 0x186   :  { %v3895_v53 = vpack.c.bf16 %v817_v49, %v813_v44  ;;  %v3186_v57 = vpack.i.bf16 %v817_v49, %v813_v44  ;;  %2984 = vmatprep.mubr.msk.bf16.mxu1 %vm1107_vm0, %v939_v51 }
 0x187   :  { %3147 = vrot.lane.b32.xlu0 %v3146_v50, %s3728_s6  ;;  %3108 = vmatprep.subr.msk.bf16.mxu1 %vm1107_vm0, %v1015_v48  ;;  %v1115_v56 = vsel %vm1107_vm0, %v1015_v48, 0 }
 0x188   :  { %2981 = vmatpush3.bf16.xpose.msra.mxu1 %v1115_v56 }
 0x189   :  { %v366_v59 = vpop.f32.mrb[4].mxu0 }
 0x18a   :  { %v821_v60 = vpop.f32.mrb[4].mxu1  ;;  %v3905_v62 = vpop.f32.mrb[5].mxu0  ;;  %v3156_v1 = vpack.i.bf16 %v366_v59, %v360_v47  ;;  %v940_v9 = vpack.c.bf16 %v366_v59, %v366_v59 }
 0x18b   :  { %v1016_v61 = vpack.c.bf16 %v821_v60, %v821_v60  ;;  %v3907_v63 = vpop.f32.mrb[5].mxu1  ;;  %v3151_v0 = vpack.i.bf16 %v356_v43, %v821_v60  ;;  %v370_v3 = vpop.f32.mrb[6].mxu0  ;;  %v3196_v8 = vpack.i.bf16 %v3905_v62, %v3893_v52 }
 0x18c   :  { %v825_v2 = vpop.f32.mrb[6].mxu1  ;;  %3157 = vrot.lane.b32.xlu1 %v3156_v1, %s3728_s6  ;;  %v371_v5 = vpop.f32.mrb[7].mxu0  ;;  %v3191_v7 = vpack.i.bf16 %v3891_v45, %v3907_v63 }
 0x18d   :  { %v826_v4 = vpop.f32.mrb[7].mxu1  ;;  %3152 = vrot.lane.b32.xlu0 %v3151_v0, %s3728_s6  ;;  %v1118_v6 = vsel %vm1107_vm0, %v1016_v61, 0  ;;  %3109 = vmatprep.subr.msk.bf16.mxu1 %vm1107_vm0, %v1016_v61 }
 0x190   :  { %2983 = vmatpush3.bf16.xpose.msra.mxu1 %v1118_v6  ;;  %3162 = vrot.lane.b32.xlu1 %v3146_v50, %s3729_s13 }
 0x191   :  { %3167 = vrot.lane.b32.xlu0 %v3151_v0, %s3729_s13 }
 0x194   :  { %3172 = vrot.lane.b32.xlu1 %v3156_v1, %s3729_s13 }
 0x195   :  { %3177 = vrot.lane.b32.xlu0 %v3146_v50, %s3730_s14 }
 0x197   :  { %2985 = vmatmul.mubr.msk.bf16.vlgmr.msra.gmra.mrb[8].mxu1 %vm1107_vm0, %v940_v9 }
 0x198   :  { %980 = vrot.lane.b32.xlu1 %v821_v60, %s3730_s14 }
 0x199   :  { %3182 = vrot.lane.b32.xlu0 %v3181_v55, %s3730_s14 }
 0x19c   :  { %904 = vrot.lane.b32.xlu1 %v366_v59, %s3730_s14 }
 0x19d   :  { %3187 = vrot.lane.b32.xlu0 %v3186_v57, %s3728_s6 }
 0x1a0   :  { %3192 = vrot.lane.b32.xlu1 %v3191_v7, %s3728_s6 }
 0x1a1   :  { %3197 = vrot.lane.b32.xlu0 %v3196_v8, %s3728_s6 }
 0x1a4   :  { %3202 = vrot.lane.b32.xlu1 %v3186_v57, %s3729_s13 }
 0x1a5   :  { %3207 = vrot.lane.b32.xlu0 %v3191_v7, %s3729_s13 }
 0x1a8   :  { %3212 = vrot.lane.b32.xlu1 %v3196_v8, %s3729_s13 }
 0x1a9   :  { %3217 = vrot.lane.b32.xlu0 %v3186_v57, %s3730_s14 }
 0x1ac   :  { %1010 = vrot.lane.b32.xlu1 %v3907_v63, %s3730_s14 }
 0x1ad   :  { %3222 = vrot.lane.b32.xlu0 %v3221_v58, %s3730_s14 }
 0x1b0   :  { %934 = vrot.lane.b32.xlu1 %v3905_v62, %s3730_s14 }
 0x1c2   :  { %v862_v10 = vpop.f32.mrb[8].mxu0 }
 0x1c3   :  { %v864_v11 = vpop.f32.mrb[9].mxu0 }
 0x1c4   :  { %v866_v12 = vpop.f32.mrb[10].mxu0 }
 0x1c5   :  { %v3226_v13 = vpack.i.bf16 %v866_v12, %v862_v10  ;;  %v868_v14 = vpop.f32.mrb[11].mxu0  ;;  %v3958_v21 = vpack.c.bf16 %v866_v12, %v862_v10  ;;  %v1355_v12 = vsel %vm1107_vm0, %v3895_v53, 0 }
 0x1c6   :  { %v3939_v15 = vpack.i.bf16 %v868_v14, %v864_v11  ;;  %v3956_v20 = vpack.c.bf16 %v868_v14, %v864_v11  ;;  %v1024_v11 = vpack.c.bf16 %v3907_v63, %v3907_v63 }
 0x1c7   :  { %3227 = vrot.lane.b32.xlu1 %v3226_v13, %s3728_s6  ;;  %3237 = vrot.lane.b32.xlu0 %v3226_v13, %s3730_s14 }
 0x1ca   :  { %v3941_v16 = vpop.f32.mrb[12].mxu0 }
 0x1cb   :  { %3232 = vrot.lane.b32.xlu1 %v3226_v13, %s3729_s13  ;;  %3242 = vrot.lane.b32.xlu0 %v3939_v15, %s3728_s6  ;;  %v3946_v17 = vpop.f32.mrb[13].mxu0 }
 0x1cc   :  { %v876_v18 = vpop.f32.mrb[14].mxu0 }
 0x1cd   :  { %v877_v19 = vpop.f32.mrb[15].mxu0 }
 0x1cf   :  { %1047 = vrot.lane.b32.xlu1 %v3941_v16, %s3729_s13  ;;  %1038 = vrot.lane.b32.xlu0 %v3941_v16, %s3728_s6 }
 0x1d3   :  { %1056 = vrot.lane.b32.xlu1 %v3941_v16, %s3730_s14 }
 0x1d7   :  { %1068 = vrot.lane.b32.xlu1 %v3946_v17, %s3728_s6 }
 0x1f9   :  { %v3148_v22 = vpop.permute.xlu0 %3147 }
 0x1fa   :  { %v3150_v23 = vunpack.i.h.bf16 %v3148_v22  ;;  %v3149_v24 = vunpack.i.l.bf16 %v3148_v22 }
 0x1fc   :  { %v1017_v25 = vpack.c.bf16 %v3150_v23, %v3149_v24  ;;  %v1358_v24 = vsel %vm1107_vm0, %v1024_v11, 0 }
 0x1fe   :  { %3110 = vmatprep.subr.msk.bf16.mxu1 %vm1107_vm0, %v1017_v25  ;;  %v1175_v26 = vsel %vm1107_vm0, %v1017_v25, 0  ;;  %v3158_v28 = vpop.permute.xlu1 %3157 }
 0x1ff   :  { %v3153_v27 = vpop.permute.xlu0 %3152  ;;  %2989 = vmatpush3.bf16.xpose.msra.mxu1 %v1175_v26  ;;  %v3159_v31 = vunpack.i.l.bf16 %v3158_v28  ;;  %v3160_v41 = vunpack.i.h.bf16 %v3158_v28 }
 0x200   :  { %v3155_v29 = vunpack.i.h.bf16 %v3153_v27  ;;  %v3154_v30 = vunpack.i.l.bf16 %v3153_v27 }
 0x201   :  { %v942_v46 = vpack.c.bf16 %v3160_v41, %v3160_v41 }
 0x202   :  { %v1018_v32 = vpack.c.bf16 %v3154_v30, %v3154_v30  ;;  %v941_v33 = vpack.c.bf16 %v3159_v31, %v3155_v29  ;;  %v3163_v34 = vpop.permute.xlu1 %3162 }
 0x203   :  { %v3165_v35 = vunpack.i.h.bf16 %v3163_v34  ;;  %v3164_v36 = vunpack.i.l.bf16 %v3163_v34  ;;  %v3168_v39 = vpop.permute.xlu0 %3167 }
 0x204   :  { %3111 = vmatprep.subr.msk.bf16.mxu1 %vm1107_vm0, %v1018_v32  ;;  %2992 = vmatprep.mubr.msk.bf16.mxu1 %vm1107_vm0, %v941_v33  ;;  %v1178_v38 = vsel %vm1107_vm0, %v1018_v32, 0  ;;  %v3169_v43 = vunpack.i.l.bf16 %v3168_v39  ;;  %v3170_v44 = vunpack.i.h.bf16 %v3168_v39 }
 0x205   :  { %v1019_v37 = vpack.c.bf16 %v3165_v35, %v3164_v36 }
 0x206   :  { %v3173_v40 = vpop.permute.xlu1 %3172  ;;  %v1020_v48 = vpack.c.bf16 %v3169_v43, %v3169_v43 }
 0x207   :  { %2991 = vmatpush3.bf16.xpose.msra.mxu1 %v1178_v38  ;;  %v3174_v42 = vunpack.i.l.bf16 %v3173_v40  ;;  %v1235_v49 = vsel %vm1107_vm0, %v1019_v37, 0  ;;  %v3178_v50 = vpop.permute.xlu0 %3177  ;;  %v3175_v60 = vunpack.i.h.bf16 %v3173_v40 }
 0x208   :  { %3112 = vmatprep.subr.msk.bf16.mxu1 %vm1107_vm0, %v1019_v37  ;;  %v3180_v51 = vunpack.i.h.bf16 %v3178_v50  ;;  %v3179_v55 = vunpack.i.l.bf16 %v3178_v50  ;;  %v1238_v59 = vsel %vm1107_vm0, %v1020_v48, 0 }
 0x209   :  { %v943_v47 = vpack.c.bf16 %v3174_v42, %v3170_v44  ;;  %v944_v2 = vpack.c.bf16 %v3175_v60, %v3175_v60 }
 0x20a   :  { %v981_v56 = vpop.permute.xlu1 %980  ;;  %v1021_v57 = vpack.c.bf16 %v3180_v51, %v3179_v55 }
 0x20b   :  { %v3183_v58 = vpop.permute.xlu0 %3182  ;;  %v1022_v4 = vpack.c.bf16 %v981_v56, %v981_v56 }
 0x20c   :  { %v3185_v0 = vunpack.i.h.bf16 %v3183_v58  ;;  %v3184_v1 = vunpack.i.l.bf16 %v3183_v58  ;;  %v1295_v6 = vsel %vm1107_vm0, %v1021_v57, 0 }
 0x20d   :  { %v1298_v8 = vsel %vm1107_vm0, %v1022_v4, 0 }
 0x20e   :  { %2993 = vmatmul.mubr.msk.bf16.vlgmr.msra.gmra.mrb[12].mxu1 %vm1107_vm0, %v942_v46  ;;  %v905_v61 = vpop.permute.xlu1 %904  ;;  %v945_v3 = vpack.c.bf16 %v3185_v0, %v3184_v1 }
 0x20f   :  { %2997 = vmatpush3.bf16.xpose.msra.mxu1 %v1235_v49  ;;  %3000 = vmatprep.mubr.msk.bf16.mxu1 %vm1107_vm0, %v943_v47  ;;  %v946_v10 = vpack.c.bf16 %v905_v61, %v905_v61  ;;  %v3188_v13 = vpop.permute.xlu0 %3187 }
 0x210   :  { %3113 = vmatprep.subr.msk.bf16.mxu1 %vm1107_vm0, %v1020_v48  ;;  %v3190_v18 = vunpack.i.h.bf16 %v3188_v13  ;;  %v3189_v19 = vunpack.i.l.bf16 %v3188_v13 }
 0x212   :  { %v3193_v5 = vpop.permute.xlu1 %3192  ;;  %v1025_v22 = vpack.c.bf16 %v3190_v18, %v3189_v19 }
 0x213   :  { %v3198_v63 = vpop.permute.xlu0 %3197  ;;  %v3194_v45 = vunpack.i.l.bf16 %v3193_v5 }
 0x214   :  { %v3199_v25 = vunpack.i.l.bf16 %v3198_v63  ;;  %v1415_v28 = vsel %vm1107_vm0, %v1025_v22, 0  ;;  %v3200_v40 = vunpack.i.h.bf16 %v3198_v63 }
 0x215   :  { %v1026_v27 = vpack.c.bf16 %v3194_v45, %v3194_v45 }
 0x216   :  { %v3203_v7 = vpop.permute.xlu1 %3202  ;;  %v950_v44 = vpack.c.bf16 %v3200_v40, %v3200_v40 }
 0x217   :  { %2999 = vmatpush3.bf16.xpose.msra.mxu1 %v1238_v59  ;;  %v3205_v33 = vunpack.i.h.bf16 %v3203_v7  ;;  %v3204_v34 = vunpack.i.l.bf16 %v3203_v7  ;;  %v1418_v38 = vsel %vm1107_vm0, %v1026_v27, 0  ;;  %v3208_v39 = vpop.permute.xlu0 %3207 }
 0x218   :  { %3114 = vmatprep.subr.msk.bf16.mxu1 %vm1107_vm0, %v1021_v57  ;;  %v3209_v42 = vunpack.i.l.bf16 %v3208_v39  ;;  %v3210_v43 = vunpack.i.h.bf16 %v3208_v39 }
 0x219   :  { %v1027_v37 = vpack.c.bf16 %v3205_v33, %v3204_v34 }
 0x21a   :  { %v3979_v9 = vpop.permute.xlu1 %3212  ;;  %v1028_v47 = vpack.c.bf16 %v3209_v42, %v3209_v42 }
 0x21b   :  { %v3214_v41 = vunpack.i.l.bf16 %v3979_v9  ;;  %v1475_v48 = vsel %vm1107_vm0, %v1027_v37, 0  ;;  %v3218_v49 = vpop.permute.xlu0 %3217  ;;  %v3215_v58 = vunpack.i.h.bf16 %v3979_v9 }
 0x21c   :  { %v3220_v50 = vunpack.i.h.bf16 %v3218_v49  ;;  %v3219_v51 = vunpack.i.l.bf16 %v3218_v49  ;;  %v1478_v57 = vsel %vm1107_vm0, %v1028_v47, 0 }
 0x21d   :  { %v951_v46 = vpack.c.bf16 %v3214_v41, %v3210_v43  ;;  %v952_v61 = vpack.c.bf16 %v3215_v58, %v3215_v58 }
 0x21e   :  { %3001 = vmatmul.mubr.msk.bf16.vlgmr.msra.gmra.mrb[16].mxu1 %vm1107_vm0, %v944_v2  ;;  %v3990_v14 = vpop.permute.xlu1 %1010  ;;  %v1029_v55 = vpack.c.bf16 %v3220_v50, %v3219_v51  ;;  %v4088_v50 = vld [vmem:[#allocation12 + $0x10] sm:$0xf] }
 0x21f   :  { %3005 = vmatpush3.bf16.xpose.msra.mxu1 %v1295_v6  ;;  %3008 = vmatprep.mubr.msk.bf16.mxu1 %vm1107_vm0, %v945_v3  ;;  %v3223_v56 = vpop.permute.xlu0 %3222  ;;  %v1030_v1 = vpack.c.bf16 %v3990_v14, %v3990_v14 }
 0x220   :  { %3115 = vmatprep.subr.msk.bf16.mxu1 %vm1107_vm0, %v1022_v4  ;;  %v3225_v59 = vunpack.i.h.bf16 %v3223_v56  ;;  %v3224_v60 = vunpack.i.l.bf16 %v3223_v56  ;;  %v1535_v2 = vsel %vm1107_vm0, %v1029_v55, 0  ;;  %v4093_v56 = vld [vmem:[#allocation12 + $0x8] sm:$0xff] }
 0x221   :  { %v1538_v3 = vsel %vm1107_vm0, %v1030_v1, 0 }
 0x222   :  { %v3993_v23 = vpop.permute.xlu1 %934  ;;  %v953_v0 = vpack.c.bf16 %v3225_v59, %v3224_v60 }
 0x223   :  { %v954_v7 = vpack.c.bf16 %v3993_v23, %v3993_v23 }
 0x227   :  { %3007 = vmatpush3.bf16.xpose.msra.mxu1 %v1298_v8 }
 0x228   :  { %3116 = vmatprep.subr.msk.bf16.mxu1 %vm1107_vm0, %v3895_v53  ;;  %v3195_v53 = vunpack.i.h.bf16 %v3193_v5 }
 0x22a   :  { %v949_v26 = vpack.c.bf16 %v3199_v25, %v3195_v53 }
 0x22e   :  { %3009 = vmatmul.mubr.msk.bf16.vlgmr.msra.gmra.mrb[20].mxu1 %vm1107_vm0, %v946_v10 }
 0x22f   :  { %3013 = vmatpush3.bf16.xpose.msra.mxu1 %v1355_v12  ;;  %3016 = vmatprep.mubr.msk.bf16.mxu1 %vm1107_vm0, %v947_v54  ;;  %v948_v54 = vpack.c.bf16 %v3905_v62, %v3905_v62  ;;  %v1092_v12 = vpack.c.bf16 %v3941_v16, %v3941_v16 }
 0x230   :  { %3117 = vmatprep.subr.msk.bf16.mxu1 %vm1107_vm0, %v1024_v11 }
 0x231   :  { %v1905_v19 = vsel %vm1903_vm1, %v1092_v12, 0 }
 0x237   :  { %3015 = vmatpush3.bf16.xpose.msra.mxu1 %v1358_v24 }
 0x238   :  { %3118 = vmatprep.subr.msk.bf16.mxu1 %vm1107_vm0, %v1025_v22 }
 0x239   :  { %v3997_v52 = vpop.permute.xlu1 %3227  ;;  %v4054_v25 = vpop.permute.xlu0 %3237 }
 0x23a   :  { %v3230_v8 = vunpack.i.h.bf16 %v3997_v52  ;;  %v3229_v9 = vunpack.i.l.bf16 %v3997_v52 }
 0x23c   :  { %v4037_v18 = vpack.c.bf16 %v3230_v8, %v3229_v9 }
 0x23d   :  { %v3233_v29 = vpop.permute.xlu1 %3232  ;;  %v4056_v45 = vpop.permute.xlu0 %3242 }
 0x23e   :  { %3017 = vmatmul.mubr.msk.bf16.vlgmr.msra.gmra.mrb[24].mxu1 %vm1107_vm0, %v948_v54  ;;  %v3235_v30 = vunpack.i.h.bf16 %v3233_v29  ;;  %v3234_v31 = vunpack.i.l.bf16 %v3233_v29 }
 0x23f   :  { %3021 = vmatpush3.bf16.xpose.msra.mxu1 %v1415_v28  ;;  %3024 = vmatprep.mubr.msk.bf16.mxu1 %vm1107_vm0, %v949_v26 }
 0x240   :  { %3119 = vmatprep.subr.msk.bf16.mxu1 %vm1107_vm0, %v1026_v27  ;;  %v1095_v32 = vpack.c.bf16 %v3235_v30, %v3234_v31 }
 0x241   :  { %v1048_v35 = vpop.permute.xlu1 %1047  ;;  %v4068_v30 = vpop.permute.xlu0 %1038 }
 0x242   :  { %3060 = vmatprep.subr.bf16.mxu0 %v1095_v32  ;;  %v1096_v62 = vpack.c.bf16 %v1048_v35, %v1048_v35 }
 0x243   :  { %3061 = vmatpush3.bf16.msra.mxu0 %v1095_v32 }
 0x244   :  { %v2019_v36 = vsel %vm1903_vm1, %v1096_v62, 0  ;;  %3126 = vmatprep.subr.msk.bf16.mxu0 %vm1903_vm1, %v1096_v62 }
 0x245   :  { %v4060_v54 = vpop.permute.xlu1 %1056 }
 0x247   :  { %3023 = vmatpush3.bf16.xpose.msra.mxu1 %v1418_v38  ;;  %3063 = vmatpush3.bf16.msra.mxu0 %v2019_v36 }
 0x248   :  { %3120 = vmatprep.subr.msk.bf16.mxu1 %vm1107_vm0, %v1027_v37  ;;  %3076 = vmatprep.subr.bf16.mxu0 %v3956_v20 }
 0x249   :  { %v4074_v33 = vpop.permute.xlu1 %1068 }
 0x24e   :  { %3025 = vmatmul.mubr.msk.bf16.vlgmr.msra.gmra.mrb[28].mxu1 %vm1107_vm0, %v950_v44 }
 0x24f   :  { %3029 = vmatpush3.bf16.xpose.msra.mxu1 %v1475_v48  ;;  %3032 = vmatprep.mubr.msk.bf16.mxu1 %vm1107_vm0, %v951_v46 }
 0x250   :  { %3121 = vmatprep.subr.msk.bf16.mxu1 %vm1107_vm0, %v1028_v47 }
 0x257   :  { %3031 = vmatpush3.bf16.xpose.msra.mxu1 %v1478_v57  ;;  %v4095_v57 = vld [vmem:[#allocation12] sm:$0xff] }
 0x258   :  { %3122 = vmatprep.subr.msk.bf16.mxu1 %vm1107_vm0, %v1029_v55 }
 0x25e   :  { %3033 = vmatmul.mubr.msk.bf16.vlgmr.msra.gmra.mrb[32].mxu1 %vm1107_vm0, %v952_v61 }
 0x25f   :  { %3037 = vmatpush3.bf16.xpose.msra.mxu1 %v1535_v2  ;;  %3040 = vmatprep.mubr.msk.bf16.mxu1 %vm1107_vm0, %v953_v0 }
 0x260   :  { %3123 = vmatprep.subr.msk.bf16.mxu1 %vm1107_vm0, %v1030_v1 }
 0x267   :  { %3039 = vmatpush3.bf16.xpose.msra.mxu1 %v1538_v3 }
 0x268   :  { %3044 = vmatprep.subr.bf16.mxu1 %v3958_v21 }
 0x26a   :  { %v2986_v4 = vpop.f32.mrb[8].mxu1 }
 0x26b   :  { %v1154_v5 = vpop.f32.mrb[9].mxu1  ;;  %v1596_v6 = vsel %vm1595_vm2, %v2986_v4, -inf }
 0x26c   :  { %v2987_v10 = vpop.f32.mrb[10].mxu1  ;;  %1597 = vmax.xlane.f32.xlu0 %v1596_v6  ;;  %v1589_v14 = vsel %vm1588_vm3, %v1154_v5, -inf }
 0x26d   :  { %v1157_v11 = vpop.f32.mrb[11].mxu1 }
 0x26e   :  { %3041 = vmatmul.mubr.msk.bf16.vlgmr.msra.gmra.mrb[36].mxu1 %vm1107_vm0, %v954_v7  ;;  %v1592_v13 = vsel %vm1588_vm3, %v1157_v11, -inf }
 0x26f   :  { %3045 = vmatpush3.bf16.msra.mxu1 %v3958_v21  ;;  %1593 = vmax.xlane.f32.xlu1 %v1592_v13 }
 0x270   :  { %1590 = vmax.xlane.f32.xlu0 %v1589_v14  ;;  %3124 = vmatprep.subr.msk.bf16.mxu1 %vm1903_vm1, %v1092_v12 }
 0x273   :  { %3047 = vmatpush3.bf16.msra.mxu1 %v1905_v19 }
 0x274   :  { %3052 = vmatprep.subr.bf16.mxu1 %v4037_v18 }
 0x2e1   :  { %v4042_v16 = vpop.f32.mrb[12].mxu1 }
 0x2e2   :  { %v4044_v22 = vpop.f32.mrb[13].mxu1  ;;  %v1605_v21 = vsel %vm1595_vm2, %v4042_v16, -inf }
 0x2e3   :  { %v2995_v63 = vpop.f32.mrb[14].mxu1  ;;  %1606 = vmax.xlane.f32.xlu0 %v1605_v21  ;;  %v1599_v53 = vsel %vm1588_vm3, %v4044_v22, -inf }
 0x2e4   :  { %v4048_v23 = vpop.f32.mrb[15].mxu1 }
 0x2e5   :  { %v1602_v24 = vsel %vm1588_vm3, %v4048_v23, -inf }
 0x2e6   :  { %1603 = vmax.xlane.f32.xlu1 %v1602_v24 }
 0x2e7   :  { %1600 = vmax.xlane.f32.xlu0 %v1599_v53 }
 0x2f1   :  { %v4058_v52 = vpop.f32.mrb[16].mxu1 }
 0x2f2   :  { %v4062_v26 = vpop.f32.mrb[17].mxu1  ;;  %v1614_v27 = vsel %vm1595_vm2, %v4058_v52, -inf }
 0x2f3   :  { %v3003_v28 = vpop.f32.mrb[18].mxu1  ;;  %1615 = vmax.xlane.f32.xlu1 %v1614_v27  ;;  %v1608_v32 = vsel %vm1588_vm3, %v4062_v26, -inf }
 0x2f4   :  { %v4066_v29 = vpop.f32.mrb[19].mxu1 }
 0x2f5   :  { %v1611_v31 = vsel %vm1588_vm3, %v4066_v29, -inf }
 0x2f6   :  { %1612 = vmax.xlane.f32.xlu0 %v1611_v31 }
 0x2f7   :  { %1609 = vmax.xlane.f32.xlu1 %v1608_v32 }
 0x2f9   :  { %v1598_v34 = vpop.xlane.xlu0 %1597 }
 0x2fa   :  { %v1664_v35 = vsub.f32 %v2986_v4, %v1598_v34 }
 0x2fc   :  { %v1690_v62 = vmul.f32 1.442695, %v1664_v35  ;;  %v1594_v36 = vpop.xlane.xlu1 %1593 }
 0x2fd   :  { %v1663_v37 = vsub.f32 %v1157_v11, %v1594_v36  ;;  %v1591_v38 = vpop.xlane.xlu0 %1590 }
 0x2fe   :  { %3458 = vpow2.f32 %v1690_v62  ;;  %v1662_v39 = vsub.f32 %v1154_v5, %v1591_v38 }
 0x2ff   :  { %v1688_v40 = vmul.f32 1.442695, %v1663_v37 }
 0x300   :  { %v1686_v41 = vmul.f32 1.442695, %v1662_v39 }
 0x301   :  { %3460 = vpow2.f32 %v1688_v40  ;;  %v4076_v42 = vpop.f32.mrb[20].mxu1 }
 0x302   :  { %3462 = vpow2.f32 %v1686_v41  ;;  %v4078_v43 = vpop.f32.mrb[21].mxu1  ;;  %v1623_v44 = vsel %vm1595_vm2, %v4076_v42, -inf }
 0x303   :  { %v3011_v46 = vpop.f32.mrb[22].mxu1  ;;  %1624 = vmax.xlane.f32.xlu0 %v1623_v44  ;;  %v1617_v49 = vsel %vm1588_vm3, %v4078_v43, -inf }
 0x304   :  { %v4082_v47 = vpop.f32.mrb[23].mxu1 }
 0x305   :  { %v1620_v48 = vsel %vm1588_vm3, %v4082_v47, -inf }
 0x306   :  { %1621 = vmax.xlane.f32.xlu1 %v1620_v48 }
 0x307   :  { %1618 = vmax.xlane.f32.xlu0 %v1617_v49 }
 0x308   :  { %v3459_v51 = vpop.eup %3458 }
 0x309   :  { %v4091_v55 = vmul.f32 %v3459_v51, %v4088_v50 }
 0x30b   :  { %v3461_v58 = vpop.eup %3460  ;;  %v1767_v59 = vsel %vm1595_vm2, %v4091_v55, 0.0 }
 0x30c   :  { %v3463_v60 = vpop.eup %3462  ;;  %1768 = vadd.xlane.f32.xlu1 %v1767_v59  ;;  %v4100_v61 = vmul.f32 %v3461_v58, %v4093_v56 }
 0x30d   :  { %v4103_v0 = vmul.f32 %v3463_v60, %v4095_v57 }
 0x30e   :  { %v1764_v1 = vsel %vm1588_vm3, %v4100_v61, 0.0 }
 0x30f   :  { %1765 = vadd.xlane.f32.xlu0 %v1764_v1  ;;  %v1761_v2 = vsel %vm1588_vm3, %v4103_v0, 0.0 }
 0x310   :  { %1762 = vadd.xlane.f32.xlu1 %v1761_v2 }
 0x311   :  { %v4109_v3 = vpop.f32.mrb[24].mxu1 }
 0x312   :  { %v4111_v4 = vpop.f32.mrb[25].mxu1  ;;  %v1632_v5 = vsel %vm1595_vm2, %v4109_v3, -inf }
 0x313   :  { %v3019_v6 = vpop.f32.mrb[26].mxu1  ;;  %v1626_v9 = vsel %vm1588_vm3, %v4111_v4, -inf }
 0x314   :  { %v4115_v7 = vpop.f32.mrb[27].mxu1  ;;  %1633 = vmax.xlane.f32.xlu1 %v1632_v5 }
 0x315   :  { %v1629_v8 = vsel %vm1588_vm3, %v4115_v7, -inf }
 0x316   :  { %1630 = vmax.xlane.f32.xlu0 %v1629_v8 }
 0x318   :  { %1627 = vmax.xlane.f32.xlu1 %v1626_v9 }
 0x321   :  { %v4121_v10 = vpop.f32.mrb[28].mxu1 }
 0x322   :  { %v4123_v11 = vpop.f32.mrb[29].mxu1  ;;  %v1641_v12 = vsel %vm1595_vm2, %v4121_v10, -inf }
 0x323   :  { %v3027_v13 = vpop.f32.mrb[30].mxu1  ;;  %1642 = vmax.xlane.f32.xlu0 %v1641_v12  ;;  %v1635_v21 = vsel %vm1588_vm3, %v4123_v11, -inf }
 0x324   :  { %v4127_v14 = vpop.f32.mrb[31].mxu1 }
 0x325   :  { %v1638_v19 = vsel %vm1588_vm3, %v4127_v14, -inf }
 0x326   :  { %1639 = vmax.xlane.f32.xlu1 %v1638_v19 }
 0x327   :  { %1636 = vmax.xlane.f32.xlu0 %v1635_v21 }
 0x331   :  { %v4133_v63 = vpop.f32.mrb[32].mxu1 }
 0x332   :  { %v4135_v24 = vpop.f32.mrb[33].mxu1  ;;  %v1650_v53 = vsel %vm1595_vm2, %v4133_v63, -inf }
 0x333   :  { %v3035_v27 = vpop.f32.mrb[34].mxu1  ;;  %1651 = vmax.xlane.f32.xlu1 %v1650_v53  ;;  %v1644_v32 = vsel %vm1588_vm3, %v4135_v24, -inf }
 0x334   :  { %v4139_v28 = vpop.f32.mrb[35].mxu1 }
 0x335   :  { %v1647_v31 = vsel %vm1588_vm3, %v4139_v28, -inf }
 0x336   :  { %1648 = vmax.xlane.f32.xlu0 %v1647_v31 }
 0x337   :  { %1645 = vmax.xlane.f32.xlu1 %v1644_v32 }
 0x341   :  { %v4145_v34 = vpop.f32.mrb[36].mxu1 }
 0x342   :  { %v4147_v35 = vpop.f32.mrb[37].mxu1  ;;  %v1659_v62 = vsel %vm1595_vm2, %v4145_v34, -inf }
 0x343   :  { %v3043_v36 = vpop.f32.mrb[38].mxu1  ;;  %1660 = vmax.xlane.f32.xlu0 %v1659_v62  ;;  %v1653_v39 = vsel %vm1588_vm3, %v4147_v35, -inf }
 0x344   :  { %v4151_v37 = vpop.f32.mrb[39].mxu1 }
 0x345   :  { %v1656_v38 = vsel %vm1588_vm3, %v4151_v37, -inf }
 0x346   :  { %1657 = vmax.xlane.f32.xlu1 %v1656_v38 }
 0x347   :  { %1654 = vmax.xlane.f32.xlu0 %v1653_v39 }
 0x357   :  { %3252 = vrot.lane.b32.xlu1 %v3939_v15, %s3730_s14 }
 0x35d   :  { %3247 = vrot.lane.b32.xlu0 %v3939_v15, %s3729_s13 }
 0x370   :  { %v1607_v40 = vpop.xlane.xlu0 %1606 }
 0x371   :  { %v1667_v41 = vsub.f32 %v4042_v16, %v1607_v40 }
 0x373   :  { %v1696_v44 = vmul.f32 1.442695, %v1667_v41  ;;  %v1604_v46 = vpop.xlane.xlu1 %1603 }
 0x374   :  { %v1666_v48 = vsub.f32 %v4048_v23, %v1604_v46  ;;  %v1601_v49 = vpop.xlane.xlu0 %1600 }
 0x375   :  { %3464 = vpow2.f32 %v1696_v44  ;;  %v1665_v51 = vsub.f32 %v4044_v22, %v1601_v49 }
 0x376   :  { %v1694_v58 = vmul.f32 1.442695, %v1666_v48 }
 0x377   :  { %v1692_v59 = vmul.f32 1.442695, %v1665_v51 }
 0x378   :  { %3466 = vpow2.f32 %v1694_v58 }
 0x379   :  { %3468 = vpow2.f32 %v1692_v59 }
 0x37f   :  { %v3465_v60 = vpop.eup %3464 }
 0x380   :  { %v1616_v1 = vpop.xlane.xlu1 %1615  ;;  %v4165_v2 = vmul.f32 %v3465_v60, %v4088_v50 }
 0x381   :  { %v1670_v15 = vsub.f32 %v4058_v52, %v1616_v1 }
 0x382   :  { %v3467_v16 = vpop.eup %3466  ;;  %v1776_v5 = vsel %vm1595_vm2, %v4165_v2, 0.0 }
 0x383   :  { %v3469_v23 = vpop.eup %3468  ;;  %v1702_v6 = vmul.f32 1.442695, %v1670_v15  ;;  %v1613_v8 = vpop.xlane.xlu0 %1612  ;;  %1777 = vadd.xlane.f32.xlu0 %v1776_v5  ;;  %v4171_v22 = vmul.f32 %v3467_v16, %v4093_v56 }
 0x384   :  { %v1669_v9 = vsub.f32 %v4066_v29, %v1613_v8  ;;  %v1610_v12 = vpop.xlane.xlu1 %1609  ;;  %v4175_v13 = vmul.f32 %v3469_v23, %v4095_v57 }
 0x385   :  { %3470 = vpow2.f32 %v1702_v6  ;;  %v1668_v52 = vsub.f32 %v4062_v26, %v1610_v12  ;;  %v1773_v19 = vsel %vm1588_vm3, %v4171_v22, 0.0 }
 0x386   :  { %v1700_v21 = vmul.f32 1.442695, %v1669_v9  ;;  %1774 = vadd.xlane.f32.xlu1 %v1773_v19  ;;  %v1770_v53 = vsel %vm1588_vm3, %v4175_v13, 0.0 }
 0x387   :  { %v1698_v27 = vmul.f32 1.442695, %v1668_v52  ;;  %1771 = vadd.xlane.f32.xlu0 %v1770_v53 }
 0x388   :  { %3472 = vpow2.f32 %v1700_v21 }
 0x389   :  { %3474 = vpow2.f32 %v1698_v27 }
 0x38f   :  { %v3471_v29 = vpop.eup %3470 }
 0x390   :  { %v1625_v31 = vpop.xlane.xlu0 %1624  ;;  %v4183_v32 = vmul.f32 %v3471_v29, %v4088_v50 }
 0x391   :  { %v1673_v62 = vsub.f32 %v4076_v42, %v1625_v31 }
 0x392   :  { %v3473_v26 = vpop.eup %3472  ;;  %v1785_v36 = vsel %vm1595_vm2, %v4183_v32, 0.0 }
 0x393   :  { %v3475_v38 = vpop.eup %3474  ;;  %v1708_v39 = vmul.f32 1.442695, %v1673_v62  ;;  %1786 = vadd.xlane.f32.xlu1 %v1785_v36  ;;  %v1622_v40 = vpop.xlane.xlu1 %1621  ;;  %v4189_v41 = vmul.f32 %v3473_v26, %v4093_v56 }
 0x394   :  { %v1672_v44 = vsub.f32 %v4082_v47, %v1622_v40  ;;  %v1619_v46 = vpop.xlane.xlu0 %1618  ;;  %v4193_v48 = vmul.f32 %v3475_v38, %v4095_v57 }
 0x395   :  { %3476 = vpow2.f32 %v1708_v39  ;;  %v1671_v42 = vsub.f32 %v4078_v43, %v1619_v46  ;;  %v1782_v49 = vsel %vm1588_vm3, %v4189_v41, 0.0 }
 0x396   :  { %v1706_v51 = vmul.f32 1.442695, %v1672_v44  ;;  %1783 = vadd.xlane.f32.xlu0 %v1782_v49  ;;  %v1779_v58 = vsel %vm1588_vm3, %v4193_v48, 0.0  ;;  %v1094_v49 = vpack.c.bf16 %v4068_v30, %v4068_v30 }
 0x397   :  { %v1704_v59 = vmul.f32 1.442695, %v1671_v42  ;;  %1780 = vadd.xlane.f32.xlu1 %v1779_v58  ;;  %v3239_v42 = vunpack.i.l.bf16 %v4054_v25 }
 0x398   :  { %3478 = vpow2.f32 %v1706_v51 }
 0x399   :  { %3480 = vpow2.f32 %v1704_v59  ;;  %v1769_v47 = vpop.xlane.xlu1 %1768 }
 0x39a   :  { %3482 = vrcp.f32 %v1769_v47 }
 0x39c   :  { %v1766_v60 = vpop.xlane.xlu0 %1765 }
 0x39d   :  { %3484 = vrcp.f32 %v1766_v60  ;;  %v1763_v1 = vpop.xlane.xlu1 %1762 }
 0x39e   :  { %3486 = vrcp.f32 %v1763_v1 }
 0x39f   :  { %v3477_v15 = vpop.eup %3476 }
 0x3a0   :  { %v4201_v43 = vmul.f32 %v3477_v15, %v4088_v50 }
 0x3a1   :  { %v1634_v16 = vpop.xlane.xlu1 %1633 }
 0x3a2   :  { %v3479_v5 = vpop.eup %3478  ;;  %v1676_v23 = vsub.f32 %v4109_v3, %v1634_v16  ;;  %v1794_v6 = vsel %vm1595_vm2, %v4201_v43, 0.0 }
 0x3a3   :  { %v3481_v8 = vpop.eup %3480  ;;  %1795 = vadd.xlane.f32.xlu0 %v1794_v6  ;;  %v1631_v9 = vpop.xlane.xlu0 %1630  ;;  %v4207_v12 = vmul.f32 %v3479_v5, %v4093_v56 }
 0x3a4   :  { %v1714_v52 = vmul.f32 1.442695, %v1676_v23  ;;  %v1675_v19 = vsub.f32 %v4115_v7, %v1631_v9  ;;  %v4211_v21 = vmul.f32 %v3481_v8, %v4095_v57  ;;  %v3483_v53 = vpop.eup %3482 }
 0x3a5   :  { %v1628_v27 = vpop.xlane.xlu1 %1627  ;;  %v1791_v3 = vsel %vm1588_vm3, %v4207_v12, 0.0  ;;  %v1859_v7 = vmul.f32 %v3483_v53, %v4091_v55 }
 0x3a6   :  { %3488 = vpow2.f32 %v1714_v52  ;;  %v1712_v29 = vmul.f32 1.442695, %v1675_v19  ;;  %v1674_v31 = vsub.f32 %v4111_v4, %v1628_v27  ;;  %1792 = vadd.xlane.f32.xlu1 %v1791_v3  ;;  %v1788_v62 = vsel %vm1588_vm3, %v4211_v21, 0.0 }
 0x3a7   :  { %v3485_v26 = vpop.eup %3484  ;;  %1789 = vadd.xlane.f32.xlu0 %v1788_v62  ;;  %v1882_v46 = vpack.c.bf16 %v1859_v7, %v1859_v7  ;;  %v3240_v4 = vunpack.i.h.bf16 %v4054_v25  ;;  %v1962_v25 = vsel %vm1903_vm1, %v1094_v49, 0 }
 0x3a8   :  { %v3487_v36 = vpop.eup %3486  ;;  %3490 = vpow2.f32 %v1712_v29  ;;  %v1710_v38 = vmul.f32 1.442695, %v1674_v31  ;;  %v1858_v39 = vmul.f32 %v3485_v26, %v4100_v61 }
 0x3a9   :  { %v1857_v40 = vmul.f32 %v3487_v36, %v4103_v0  ;;  %v4233_v59 = vpack.c.bf16 %v3240_v4, %v3239_v42 }
 0x3aa   :  { %3492 = vpow2.f32 %v1710_v38 }
 0x3ab   :  { %v1881_v44 = vpack.c.bf16 %v1858_v39, %v1857_v40 }
 0x3ad   :  { %3048 = vmatprep.mubr.msk.bf16.mxu1 %vm1588_vm3, %v1881_v44 }
 0x3ae   :  { %3049 = vmatmul.mubr.msk.bf16.vlgmr.msra.gmra.mrb[40].mxu1 %vm1588_vm3, %v1882_v46 }
 0x3af   :  { %3053 = vmatpush3.bf16.msra.mxu1 %v4037_v18 }
 0x3b0   :  { %v3489_v55 = vpop.eup %3488  ;;  %3125 = vmatprep.subr.msk.bf16.mxu1 %vm1903_vm1, %v1094_v49  ;;  %v1643_v61 = vpop.xlane.xlu0 %1642 }
 0x3b1   :  { %v1679_v0 = vsub.f32 %v4121_v10, %v1643_v61  ;;  %v4231_v51 = vmul.f32 %v3489_v55, %v4088_v50 }
 0x3b2   :  { %v3491_v58 = vpop.eup %3490 }
 0x3b3   :  { %v1720_v47 = vmul.f32 1.442695, %v1679_v0  ;;  %3055 = vmatpush3.bf16.msra.mxu1 %v1962_v25  ;;  %v1640_v30 = vpop.xlane.xlu1 %1639  ;;  %v1803_v18 = vsel %vm1595_vm2, %v4231_v51, 0.0  ;;  %v4239_v60 = vmul.f32 %v3491_v58, %v4093_v56 }
 0x3b4   :  { %v3493_v1 = vpop.eup %3492  ;;  %3068 = vmatprep.subr.bf16.mxu1 %v4233_v59  ;;  %v1678_v10 = vsub.f32 %v4127_v14, %v1640_v30  ;;  %v1637_v15 = vpop.xlane.xlu0 %1636  ;;  %1804 = vadd.xlane.f32.xlu1 %v1803_v18 }
 0x3b5   :  { %3494 = vpow2.f32 %v1720_v47  ;;  %v1677_v16 = vsub.f32 %v4123_v11, %v1637_v15  ;;  %v1800_v5 = vsel %vm1588_vm3, %v4239_v60, 0.0  ;;  %v4247_v23 = vmul.f32 %v3493_v1, %v4095_v57 }
 0x3b6   :  { %v1718_v6 = vmul.f32 1.442695, %v1678_v10  ;;  %1801 = vadd.xlane.f32.xlu0 %v1800_v5 }
 0x3b7   :  { %v1716_v8 = vmul.f32 1.442695, %v1677_v16  ;;  %v1797_v9 = vsel %vm1588_vm3, %v4247_v23, 0.0 }
 0x3b8   :  { %3496 = vpow2.f32 %v1718_v6  ;;  %1798 = vadd.xlane.f32.xlu1 %v1797_v9 }
 0x3b9   :  { %3498 = vpow2.f32 %v1716_v8 }
 0x3bf   :  { %v3495_v14 = vpop.eup %3494 }
 0x3c0   :  { %v1652_v52 = vpop.xlane.xlu1 %1651  ;;  %v4252_v19 = vmul.f32 %v3495_v14, %v4088_v50 }
 0x3c1   :  { %v1682_v11 = vsub.f32 %v4133_v63, %v1652_v52 }
 0x3c2   :  { %v3497_v53 = vpop.eup %3496  ;;  %v1812_v27 = vsel %vm1595_vm2, %v4252_v19, 0.0 }
 0x3c3   :  { %v3499_v3 = vpop.eup %3498  ;;  %v1726_v29 = vmul.f32 1.442695, %v1682_v11  ;;  %1813 = vadd.xlane.f32.xlu0 %v1812_v27  ;;  %v1649_v31 = vpop.xlane.xlu0 %1648  ;;  %v4258_v62 = vmul.f32 %v3497_v53, %v4093_v56 }
 0x3c4   :  { %v1681_v26 = vsub.f32 %v4139_v28, %v1649_v31  ;;  %v1646_v36 = vpop.xlane.xlu1 %1645  ;;  %v4262_v7 = vmul.f32 %v3499_v3, %v4095_v57 }
 0x3c5   :  { %3500 = vpow2.f32 %v1726_v29  ;;  %v1680_v63 = vsub.f32 %v4135_v24, %v1646_v36  ;;  %v1809_v38 = vsel %vm1588_vm3, %v4258_v62, 0.0 }
 0x3c6   :  { %v1724_v39 = vmul.f32 1.442695, %v1681_v26  ;;  %1810 = vadd.xlane.f32.xlu1 %v1809_v38  ;;  %v1806_v40 = vsel %vm1588_vm3, %v4262_v7, 0.0 }
 0x3c7   :  { %v1722_v44 = vmul.f32 1.442695, %v1680_v63  ;;  %1807 = vadd.xlane.f32.xlu0 %v1806_v40 }
 0x3c8   :  { %3502 = vpow2.f32 %v1724_v39 }
 0x3c9   :  { %3504 = vpow2.f32 %v1722_v44 }
 0x3cf   :  { %v3501_v28 = vpop.eup %3500 }
 0x3d0   :  { %v1661_v46 = vpop.xlane.xlu0 %1660  ;;  %v4270_v4 = vmul.f32 %v3501_v28, %v4088_v50  ;;  %v3245_v28 = vunpack.i.h.bf16 %v4056_v45 }
 0x3d1   :  { %v1685_v42 = vsub.f32 %v4145_v34, %v1661_v46  ;;  %v3244_v46 = vunpack.i.l.bf16 %v4056_v45 }
 0x3d2   :  { %v3503_v24 = vpop.eup %3502  ;;  %v1821_v49 = vsel %vm1595_vm2, %v4270_v4, 0.0 }
 0x3d3   :  { %v3505_v55 = vpop.eup %3504  ;;  %v1732_v61 = vmul.f32 1.442695, %v1685_v42  ;;  %1822 = vadd.xlane.f32.xlu1 %v1821_v49  ;;  %v1658_v0 = vpop.xlane.xlu1 %1657  ;;  %v4283_v1 = vmul.f32 %v3503_v24, %v4093_v56 }
 0x3d4   :  { %v1684_v58 = vsub.f32 %v4151_v37, %v1658_v0  ;;  %v1655_v25 = vpop.xlane.xlu0 %1654  ;;  %v4277_v47 = vmul.f32 %v3505_v55, %v4095_v57 }
 0x3d5   :  { %3506 = vpow2.f32 %v1732_v61  ;;  %v1683_v30 = vsub.f32 %v4147_v35, %v1655_v25  ;;  %v1818_v37 = vsel %vm1588_vm3, %v4283_v1, 0.0 }
 0x3d6   :  { %v1730_v18 = vmul.f32 1.442695, %v1684_v58  ;;  %v1815_v34 = vsel %vm1588_vm3, %v4277_v47, 0.0 }
 0x3d7   :  { %v1728_v10 = vmul.f32 1.442695, %v1683_v30  ;;  %1816 = vadd.xlane.f32.xlu0 %v1815_v34  ;;  %v1100_v30 = vpack.c.bf16 %v3946_v17, %v3946_v17 }
 0x3d8   :  { %3508 = vpow2.f32 %v1730_v18 }
 0x3d9   :  { %3510 = vpow2.f32 %v1728_v10 }
 0x3db   :  { %1819 = vadd.xlane.f32.xlu0 %v1818_v37 }
 0x3df   :  { %v3507_v15 = vpop.eup %3506 }
 0x3e0   :  { %v4288_v16 = vmul.f32 %v3507_v15, %v4088_v50  ;;  %v3248_v50 = vpop.permute.xlu0 %3247 }
 0x3e1   :  { %v3250_v18 = vunpack.i.h.bf16 %v3248_v50  ;;  %v3249_v34 = vunpack.i.l.bf16 %v3248_v50 }
 0x3e2   :  { %v3509_v35 = vpop.eup %3508  ;;  %v1830_v5 = vsel %vm1595_vm2, %v4288_v16, 0.0 }
 0x3e3   :  { %v3511_v6 = vpop.eup %3510  ;;  %1831 = vadd.xlane.f32.xlu1 %v1830_v5  ;;  %v4293_v8 = vmul.f32 %v3509_v35, %v4093_v56  ;;  %v4306_v56 = vpop.permute.xlu1 %3252 }
 0x3e4   :  { %v4296_v9 = vmul.f32 %v3511_v6, %v4095_v57  ;;  %v3255_v50 = vunpack.i.h.bf16 %v4306_v56 }
 0x3e5   :  { %v1827_v14 = vsel %vm1588_vm3, %v4293_v8, 0.0 }
 0x3e6   :  { %v1824_v52 = vsel %vm1588_vm3, %v4296_v9, 0.0 }
 0x3e7   :  { %1825 = vadd.xlane.f32.xlu0 %v1824_v52  ;;  %1828 = vadd.xlane.f32.xlu1 %v1827_v14  ;;  %v1102_v52 = vpack.c.bf16 %v4074_v33, %v4074_v33 }
 0x3f8   :  { %1086 = vrot.lane.b32.xlu1 %v3946_v17, %s3730_s14 }
 0x3fd   :  { %1077 = vrot.lane.b32.xlu0 %v3946_v17, %s3729_s13 }
 0x410   :  { %v1778_v11 = vpop.xlane.xlu0 %1777 }
 0x411   :  { %3512 = vrcp.f32 %v1778_v11  ;;  %v3254_v11 = vunpack.i.l.bf16 %v4306_v56 }
 0x413   :  { %v1775_v57 = vpop.xlane.xlu1 %1774 }
 0x414   :  { %3514 = vrcp.f32 %v1775_v57  ;;  %v1772_v53 = vpop.xlane.xlu0 %1771 }
 0x415   :  { %3516 = vrcp.f32 %v1772_v53 }
 0x41b   :  { %v3513_v27 = vpop.eup %3512 }
 0x41c   :  { %v1862_v31 = vmul.f32 %v3513_v27, %v4165_v2  ;;  %v1098_v2 = vpack.c.bf16 %v4060_v54, %v4060_v54 }
 0x41e   :  { %v3515_v3 = vpop.eup %3514  ;;  %v1884_v40 = vpack.c.bf16 %v1862_v31, %v1862_v31 }
 0x41f   :  { %v3517_v29 = vpop.eup %3516  ;;  %v1861_v26 = vmul.f32 %v3515_v3, %v4171_v22  ;;  %v1101_v22 = vpack.c.bf16 %v3245_v28, %v3244_v46 }
 0x420   :  { %v1787_v36 = vpop.xlane.xlu1 %1786  ;;  %v1860_v63 = vmul.f32 %v3517_v29, %v4175_v13  ;;  %v2076_v13 = vsel %vm1903_vm1, %v1098_v2, 0 }
 0x421   :  { %3518 = vrcp.f32 %v1787_v36 }
 0x422   :  { %v1883_v38 = vpack.c.bf16 %v1861_v26, %v1860_v63 }
 0x423   :  { %v1784_v39 = vpop.xlane.xlu0 %1783 }
 0x424   :  { %3520 = vrcp.f32 %v1784_v39  ;;  %3056 = vmatprep.mubr.msk.bf16.mxu1 %vm1588_vm3, %v1883_v38  ;;  %v1781_v44 = vpop.xlane.xlu1 %1780 }
 0x425   :  { %3522 = vrcp.f32 %v1781_v44  ;;  %3057 = vmatmul.mubr.msk.bf16.vlgmr.msra.gmra.mrb[44].mxu1 %vm1588_vm3, %v1884_v40 }
 0x426   :  { %3069 = vmatpush3.bf16.msra.mxu1 %v4233_v59 }
 0x427   :  { %3127 = vmatprep.subr.msk.bf16.mxu1 %vm1903_vm1, %v1098_v2 }
 0x42a   :  { %3071 = vmatpush3.bf16.msra.mxu1 %v2076_v13 }
 0x42b   :  { %3084 = vmatprep.subr.bf16.mxu1 %v1101_v22  ;;  %v3519_v42 = vpop.eup %3518 }
 0x42c   :  { %v1865_v45 = vmul.f32 %v3519_v42, %v4183_v32  ;;  %v1103_v32 = vpack.c.bf16 %v3250_v18, %v3249_v34 }
 0x42e   :  { %v3521_v24 = vpop.eup %3520  ;;  %v1886_v59 = vpack.c.bf16 %v1865_v45, %v1865_v45 }
 0x42f   :  { %v3523_v49 = vpop.eup %3522  ;;  %v1864_v55 = vmul.f32 %v3521_v24, %v4189_v41  ;;  %v2133_v41 = vsel %vm1903_vm1, %v1100_v30, 0 }
 0x430   :  { %v1796_v54 = vpop.xlane.xlu0 %1795  ;;  %v1863_v61 = vmul.f32 %v3523_v49, %v4193_v48 }
 0x431   :  { %3524 = vrcp.f32 %v1796_v54 }
 0x432   :  { %v1885_v0 = vpack.c.bf16 %v1864_v55, %v1863_v61 }
 0x433   :  { %v1793_v58 = vpop.xlane.xlu1 %1792 }
 0x434   :  { %3526 = vrcp.f32 %v1793_v58  ;;  %v1790_v25 = vpop.xlane.xlu0 %1789  ;;  %3064 = vmatprep.mubr.msk.bf16.mxu0 %vm1588_vm3, %v1885_v0 }
 0x435   :  { %3528 = vrcp.f32 %v1790_v25  ;;  %3065 = vmatmul.mubr.msk.bf16.vlgmr.msra.gmra.mrb[16].mxu0 %vm1588_vm3, %v1886_v59 }
 0x436   :  { %3077 = vmatpush3.bf16.msra.mxu0 %v3956_v20 }
 0x437   :  { %3128 = vmatprep.subr.msk.bf16.mxu0 %vm1903_vm1, %v1100_v30 }
 0x43a   :  { %3079 = vmatpush3.bf16.msra.mxu0 %v2133_v41 }
 0x43b   :  { %3092 = vmatprep.subr.bf16.mxu0 %v1103_v32  ;;  %v3525_v48 = vpop.eup %3524 }
 0x43c   :  { %v1868_v15 = vmul.f32 %v3525_v48, %v4201_v43 }
 0x43e   :  { %v3527_v10 = vpop.eup %3526  ;;  %v1888_v14 = vpack.c.bf16 %v1868_v15, %v1868_v15 }
 0x43f   :  { %v3529_v37 = vpop.eup %3528  ;;  %v1867_v17 = vmul.f32 %v3527_v10, %v4207_v12  ;;  %v2190_v12 = vsel %vm1903_vm1, %v1102_v52, 0 }
 0x440   :  { %v1866_v35 = vmul.f32 %v3529_v37, %v4211_v21  ;;  %v1105_v21 = vpack.c.bf16 %v3255_v50, %v3254_v11  ;;  %v3410_v50 = vld [vmem:[#allocation11] ss:$8 sps:$4 sm:$0xff]   ;;  %v3412_v11 = vld [vmem:[#allocation11 + $0x4] ss:$8 sps:$4 sm:$0xff]  }
 0x441   :  { %v1805_v5 = vpop.xlane.xlu1 %1804 }
 0x442   :  { %v1887_v6 = vpack.c.bf16 %v1867_v17, %v1866_v35  ;;  %3530 = vrcp.f32 %v1805_v5 }
 0x443   :  { %v1802_v20 = vpop.xlane.xlu0 %1801 }
 0x444   :  { %3532 = vrcp.f32 %v1802_v20  ;;  %3072 = vmatprep.mubr.msk.bf16.mxu1 %vm1588_vm3, %v1887_v6 }
 0x445   :  { %3073 = vmatmul.mubr.msk.bf16.vlgmr.msra.gmra.mrb[48].mxu1 %vm1588_vm3, %v1888_v14  ;;  %v1799_v43 = vpop.xlane.xlu1 %1798 }
 0x446   :  { %3085 = vmatpush3.bf16.msra.mxu1 %v1101_v22  ;;  %3534 = vrcp.f32 %v1799_v43  ;;  %v3415_v43 = vld [vmem:[#allocation11 + $0x14] ss:$8 sps:$4 sm:$0xff]  }
 0x447   :  { %3129 = vmatprep.subr.msk.bf16.mxu1 %vm1903_vm1, %v1102_v52 }
 0x44a   :  { %3087 = vmatpush3.bf16.msra.mxu1 %v2190_v12  ;;  %v3413_v12 = vld [vmem:[#allocation11 + $0x10] ss:$8 sps:$4 sm:$0xff]  }
 0x44b   :  { %3100 = vmatprep.subr.bf16.mxu1 %v1105_v21 }
 0x44c   :  { %v3531_v57 = vpop.eup %3530 }
 0x44d   :  { %v1871_v33 = vmul.f32 %v3531_v57, %v4231_v51  ;;  %v3416_v57 = vld [vmem:[#allocation11 + $0x20] ss:$8 sps:$4 sm:$0xff]  }
 0x44e   :  { %v3533_v53 = vpop.eup %3532 }
 0x44f   :  { %v1870_v29 = vmul.f32 %v3533_v53, %v4239_v60  ;;  %v1890_v63 = vpack.c.bf16 %v1871_v33, %v1871_v33  ;;  %v3421_v53 = vld [vmem:[#allocation11 + $0x34] ss:$8 sps:$4 sm:$0xff]  }
 0x450   :  { %v3535_v27 = vpop.eup %3534  ;;  %v1814_v3 = vpop.xlane.xlu0 %1813 }
 0x451   :  { %v1869_v56 = vmul.f32 %v3535_v27, %v4247_v23  ;;  %3536 = vrcp.f32 %v1814_v3 }
 0x453   :  { %v1811_v31 = vpop.xlane.xlu1 %1810  ;;  %v1889_v26 = vpack.c.bf16 %v1870_v29, %v1869_v56  ;;  %v3419_v56 = vld [vmem:[#allocation11 + $0x30] ss:$8 sps:$4 sm:$0xff]  }
 0x454   :  { %3538 = vrcp.f32 %v1811_v31  ;;  %v1808_v36 = vpop.xlane.xlu0 %1807  ;;  %v3424_v31 = vld [vmem:[#allocation11 + $0x44] ss:$8 sps:$4 sm:$0xff]  }
 0x455   :  { %3540 = vrcp.f32 %v1808_v36  ;;  %3080 = vmatprep.mubr.msk.bf16.mxu0 %vm1588_vm3, %v1889_v26  ;;  %v3422_v26 = vld [vmem:[#allocation11 + $0x40] ss:$8 sps:$4 sm:$0xff]  }
 0x456   :  { %3081 = vmatmul.mubr.msk.bf16.vlgmr.msra.gmra.mrb[20].mxu0 %vm1588_vm3, %v1890_v63 }
 0x457   :  { %3093 = vmatpush3.bf16.msra.mxu0 %v1103_v32 }
 0x45b   :  { %v3537_v38 = vpop.eup %3536 }
 0x45c   :  { %v1874_v40 = vmul.f32 %v3537_v38, %v4252_v19 }
 0x45e   :  { %v3539_v39 = vpop.eup %3538  ;;  %v1892_v28 = vpack.c.bf16 %v1874_v40, %v1874_v40  ;;  %v3427_v40 = vld [vmem:[#allocation11 + $0x54] ss:$8 sps:$4 sm:$0xff]  }
 0x45f   :  { %v3541_v51 = vpop.eup %3540  ;;  %v1873_v23 = vmul.f32 %v3539_v39, %v4258_v62 }
 0x460   :  { %v1872_v60 = vmul.f32 %v3541_v51, %v4262_v7  ;;  %v1823_v22 = vpop.xlane.xlu1 %1822  ;;  %v3425_v51 = vld [vmem:[#allocation11 + $0x50] ss:$8 sps:$4 sm:$0xff]  }
 0x462   :  { %v1891_v44 = vpack.c.bf16 %v1873_v23, %v1872_v60  ;;  %v3428_v23 = vld [vmem:[#allocation11 + $0x60] ss:$8 sps:$4 sm:$0xff]   ;;  %v3430_v60 = vld [vmem:[#allocation11 + $0x64] ss:$8 sps:$4 sm:$0xff]  }
 0x464   :  { %v1817_v46 = vpop.xlane.xlu0 %1816  ;;  %3088 = vmatprep.mubr.msk.bf16.mxu1 %vm1588_vm3, %v1891_v44  ;;  %v3433_v44 = vld [vmem:[#allocation11 + $0x74] ss:$8 sps:$4 sm:$0xff]  }
 0x465   :  { %3089 = vmatmul.mubr.msk.bf16.vlgmr.msra.gmra.mrb[52].mxu1 %vm1588_vm3, %v1892_v28  ;;  %3542 = vrcp.f32 %v1817_v46  ;;  %v3431_v28 = vld [vmem:[#allocation11 + $0x70] ss:$8 sps:$4 sm:$0xff]   ;;  %v3436_v46 = vld [vmem:[#allocation11 + $0x84] ss:$8 sps:$4 sm:$0xff]  }
 0x466   :  { %3101 = vmatpush3.bf16.msra.mxu1 %v1105_v21  ;;  %v3418_v21 = vld [vmem:[#allocation11 + $0x24] ss:$8 sps:$4 sm:$0xff]  }
 0x468   :  { %v1820_v2 = vpop.xlane.xlu0 %1819 }
 0x469   :  { %3544 = vrcp.f32 %v1820_v2  ;;  %v3434_v2 = vld [vmem:[#allocation11 + $0x80] ss:$8 sps:$4 sm:$0xff]  }
 0x46a   :  { %3546 = vrcp.f32 %v1823_v22 }
 0x46f   :  { %v3543_v42 = vpop.eup %3542 }
 0x470   :  { %v1832_v13 = vpop.xlane.xlu1 %1831  ;;  %v1875_v7 = vmul.f32 %v3543_v42, %v4277_v47 }
 0x471   :  { %3548 = vrcp.f32 %v1832_v13  ;;  %v3439_v13 = vld [vmem:[#allocation11 + $0x94] ss:$8 sps:$4 sm:$0xff]  }
 0x473   :  { %v3545_v19 = vpop.eup %3544 }
 0x474   :  { %v1826_v62 = vpop.xlane.xlu0 %1825  ;;  %v1829_v24 = vpop.xlane.xlu1 %1828  ;;  %v1876_v49 = vmul.f32 %v3545_v19, %v4283_v1 }
 0x475   :  { %3550 = vrcp.f32 %v1826_v62  ;;  %v3547_v45 = vpop.eup %3546 }
 0x476   :  { %3552 = vrcp.f32 %v1829_v24  ;;  %v1893_v55 = vpack.c.bf16 %v1876_v49, %v1875_v7  ;;  %v1877_v0 = vmul.f32 %v3547_v45, %v4270_v4  ;;  %v3437_v24 = vld [vmem:[#allocation11 + $0x90] ss:$8 sps:$4 sm:$0xff]   ;;  %v3442_v7 = vld [vmem:[#allocation11 + $0xa4] ss:$8 sps:$4 sm:$0xff]   ;;  %v3440_v49 = vld [vmem:[#allocation11 + $0xa0] ss:$8 sps:$4 sm:$0xff]  }
 0x477   :  { %v3445_v45 = vld [vmem:[#allocation11 + $0xb4] ss:$8 sps:$4 sm:$0xff]  }
 0x478   :  { %v1078_v54 = vpop.permute.xlu0 %1077  ;;  %v1087_v61 = vpop.permute.xlu1 %1086  ;;  %3096 = vmatprep.mubr.msk.bf16.mxu0 %vm1588_vm3, %v1893_v55  ;;  %v1894_v1 = vpack.c.bf16 %v1877_v0, %v1877_v0  ;;  %v3443_v55 = vld [vmem:[#allocation11 + $0xb0] ss:$8 sps:$4 sm:$0xff]  }
 0x479   :  { %v1104_v59 = vpack.c.bf16 %v1078_v54, %v1078_v54  ;;  %v1106_v58 = vpack.c.bf16 %v1087_v61, %v1087_v61  ;;  %v3446_v54 = vld [vmem:[#allocation11 + $0xc0] ss:$8 sps:$4 sm:$0xff]   ;;  %v3448_v61 = vld [vmem:[#allocation11 + $0xc4] ss:$8 sps:$4 sm:$0xff]   ;;  %v3449_v0 = vld [vmem:[#allocation11 + $0xd0] ss:$8 sps:$4 sm:$0xff]  }
 0x47b   :  { %v2247_v25 = vsel %vm1903_vm1, %v1104_v59, 0  ;;  %v2304_v30 = vsel %vm1903_vm1, %v1106_v58, 0  ;;  %3130 = vmatprep.subr.msk.bf16.mxu0 %vm1903_vm1, %v1104_v59  ;;  %3131 = vmatprep.subr.msk.bf16.mxu1 %vm1903_vm1, %v1106_v58  ;;  %v3549_v47 = vpop.eup %3548  ;;  %v3451_v59 = vld [vmem:[#allocation11 + $0xd4] ss:$8 sps:$4 sm:$0xff]  }
 0x47c   :  { %3095 = vmatpush3.bf16.msra.mxu0 %v2247_v25  ;;  %3103 = vmatpush3.bf16.msra.mxu1 %v2304_v30  ;;  %v1880_v4 = vmul.f32 %v3549_v47, %v4288_v16  ;;  %v3452_v25 = vld [vmem:[#allocation11 + $0xe0] ss:$8 sps:$4 sm:$0xff]   ;;  %v3454_v30 = vld [vmem:[#allocation11 + $0xe4] ss:$8 sps:$4 sm:$0xff]  }
 0x47d   :  { %2671 = vmatprep.subr.bf16.mxu0 %v3412_v11 }
 0x47e   :  { %v1896_v35 = vpack.c.bf16 %v1880_v4, %v1880_v4  ;;  %v3457_v4 = vld [vmem:[#allocation11 + $0xf4] ss:$8 sps:$4 sm:$0xff]  }
 0x47f   :  { %v3551_v18 = vpop.eup %3550  ;;  %3097 = vmatmul.mubr.msk.bf16.vlgmr.msra.gmra.mrb[24].mxu0 %vm1588_vm3, %v1894_v1 }
 0x480   :  { %v3553_v34 = vpop.eup %3552  ;;  %v1878_v32 = vmul.f32 %v3551_v18, %v4296_v9  ;;  %2672 = vmatpush1.bf16.msra.mxu0 %v3410_v50 }
 0x481   :  { %v3050_v41 = vpop.f32.mrb[40].mxu1  ;;  %v1879_v48 = vmul.f32 %v3553_v34, %v4293_v8  ;;  %2673 = vmatprep.subr.bf16.mxu0 %v3415_v43  ;;  %v3455_v34 = vld [vmem:[#allocation11 + $0xf0] ss:$8 sps:$4 sm:$0xff]  }
 0x482   :  { %2357 = vst.msk [vmem:[#allocation2 + $0x20] sm:$0xf] %vm2356_vm4, %v3050_v41  ;;  %v1941_v10 = vpop.f32.mrb[41].mxu1 }
 0x483   :  { %2354 = vst.msk [vmem:[#allocation2] sm:$0xff] %vm1107_vm0, %v1941_v10  ;;  %v3051_v37 = vpop.f32.mrb[42].mxu1  ;;  %v1895_v15 = vpack.c.bf16 %v1879_v48, %v1878_v32 }
 0x484   :  { %v1944_v17 = vpop.f32.mrb[43].mxu1  ;;  %2674 = vmatpush1.bf16.msra.mxu0 %v3413_v12 }
 0x485   :  { %2355 = vst.msk [vmem:[#allocation2 + $0x10] sm:$0xff] %vm1107_vm0, %v1944_v17  ;;  %3104 = vmatprep.mubr.msk.bf16.mxu1 %vm1588_vm3, %v1895_v15  ;;  %2675 = vmatprep.subr.bf16.mxu0 %v3418_v21 }
 0x486   :  { %3105 = vmatmul.mubr.msk.bf16.vlgmr.msra.gmra.mrb[56].mxu1 %vm1588_vm3, %v1896_v35 }
 0x488   :  { %2676 = vmatpush1.bf16.msra.mxu0 %v3416_v57 }
 0x489   :  { %2677 = vmatprep.subr.bf16.mxu0 %v3421_v53 }
 0x48c   :  { %2678 = vmatpush1.bf16.msra.mxu0 %v3419_v56 }
 0x48d   :  { %2679 = vmatprep.subr.bf16.mxu0 %v3424_v31 }
 0x490   :  { %2680 = vmatpush1.bf16.msra.mxu0 %v3422_v26 }
 0x491   :  { %2681 = vmatprep.subr.bf16.mxu0 %v3427_v40  ;;  %v2499_v40 = vld [vmem:[%s4435_s5] sm:$0x3]  ;;  %s3686_s5 = scalar_lea.vmem %s2734_s12, 768 }
 0x492   :  { %p3687_p6 = scmp.ne.s32.totalorder %s2734_s12, %s3686_s5  ;;  %p3692_p8 = scmp.lt.s32.totalorder %s3686_s5, %s3686_s5 }
 0x494   :  { %2682 = vmatpush1.bf16.msra.mxu0 %v3425_v51  ;;  %p3693_p9 = por %p3692_p8, %p3691_p7 }
 0x495   :  { %2683 = vmatprep.subr.bf16.mxu0 %v3430_v60 }
 0x496   :  { %p3694_p10 = pnand %p3693_p9, %p3687_p6 }
 0x498   :  { %2684 = vmatpush1.bf16.msra.mxu0 %v3428_v23 }
 0x499   :  { %2685 = vmatprep.subr.bf16.mxu0 %v3433_v44 }
 0x49c   :  { %2686 = vmatpush1.bf16.msra.mxu0 %v3431_v28 }
 0x49d   :  { %2687 = vmatprep.subr.bf16.mxu0 %v3436_v46 }
 0x4a0   :  { %2688 = vmatpush1.bf16.msra.mxu0 %v3434_v2 }
 0x4a1   :  { %2689 = vmatprep.subr.bf16.mxu0 %v3439_v13 }
 0x4a4   :  { %2690 = vmatpush1.bf16.msra.mxu0 %v3437_v24 }
 0x4a5   :  { %2691 = vmatprep.subr.bf16.mxu0 %v3442_v7 }
 0x4a8   :  { %2692 = vmatpush1.bf16.msra.mxu0 %v3440_v49 }
 0x4a9   :  { %2693 = vmatprep.subr.bf16.mxu0 %v3445_v45 }
 0x4ac   :  { %2694 = vmatpush1.bf16.msra.mxu0 %v3443_v55 }
 0x4ad   :  { %2695 = vmatprep.subr.bf16.mxu0 %v3448_v61 }
 0x4b0   :  { %2696 = vmatpush1.bf16.msra.mxu0 %v3446_v54 }
 0x4b1   :  { %2697 = vmatprep.subr.bf16.mxu0 %v3451_v59 }
 0x4b4   :  { %2698 = vmatpush1.bf16.msra.mxu0 %v3449_v0 }
 0x4b5   :  { %2699 = vmatprep.subr.bf16.mxu0 %v3454_v30 }
 0x4b8   :  { %2700 = vmatpush1.bf16.msra.mxu0 %v3452_v25 }
 0x4b9   :  { %2701 = vmatprep.subr.bf16.mxu0 %v3457_v4 }
 0x4bc   :  { %2702 = vmatpush1.bf16.msra.mxu0 %v3455_v34 }
 0x4f8   :  { %v4368_v16 = vpop.f32.mrb[44].mxu1 }
 0x4f9   :  { %v1998_v9 = vpop.f32.mrb[45].mxu1 }
 0x4fa   :  { %2361 = vrot.lane.b32.xlu0 %v1998_v9, %s3730_s14  ;;  %v3059_v8 = vpop.f32.mrb[46].mxu1 }
 0x4fb   :  { %v2001_v5 = vpop.f32.mrb[47].mxu1 }
 0x4fc   :  { %2363 = vrot.lane.b32.xlu1 %v2001_v5, %s3730_s14 }
 0x508   :  { %v4372_v6 = vpop.f32.mrb[16].mxu0 }
 0x509   :  { %v2055_v20 = vpop.f32.mrb[17].mxu0 }
 0x50a   :  { %2378 = vrot.lane.b32.xlu0 %v2055_v20, %s3729_s13  ;;  %v3067_v14 = vpop.f32.mrb[18].mxu0 }
 0x50b   :  { %v2058_v52 = vpop.f32.mrb[19].mxu0 }
 0x50c   :  { %2380 = vrot.lane.b32.xlu1 %v2058_v52, %s3729_s13 }
 0x518   :  { %v4376_v27 = vpop.f32.mrb[48].mxu1 }
 0x519   :  { %v2112_v33 = vpop.f32.mrb[49].mxu1 }
 0x51a   :  { %v3075_v3 = vpop.f32.mrb[50].mxu1  ;;  %2395 = vrot.lane.b32.xlu0 %v2112_v33, %s3728_s6 }
 0x51b   :  { %v2115_v29 = vpop.f32.mrb[51].mxu1 }
 0x51c   :  { %2397 = vrot.lane.b32.xlu1 %v2115_v29, %s3728_s6 }
 0x529   :  { %v3082_v36 = vpop.f32.mrb[20].mxu0 }
 0x52a   :  { %2411 = vst.msk [vmem:[#allocation2 + $0x28] sm:$0xf] %vm2356_vm4, %v3082_v36  ;;  %v2169_v63 = vpop.f32.mrb[21].mxu0 }
 0x52b   :  { %2409 = vst.msk [vmem:[#allocation2 + $0x8] sm:$0xff] %vm1107_vm0, %v2169_v63  ;;  %v3083_v38 = vpop.f32.mrb[22].mxu0 }
 0x52c   :  { %v2172_v39 = vpop.f32.mrb[23].mxu0  ;;  %v2501_v38 = vlaneseq }
 0x52d   :  { %2410 = vst.msk [vmem:[#allocation2 + $0x18] sm:$0xff] %vm1107_vm0, %v2172_v39 }
 0x52e   :  { %v2502_v39 = vshrl.u32 %v2501_v38, 7 }
 0x530   :  { %v2503_v51 = vsub.s32 0, %v2502_v39  ;;  %v2507_v23 = vsub.s32 1, %v2502_v39 }
 0x532   :  { %v2504_v60 = vrot.slane %v2499_v40, %v2503_v51  ;;  %v2508_v44 = vrot.slane %v2499_v40, %v2507_v23 }
 0x538   :  { %v3090_v22 = vpop.f32.mrb[52].mxu1 }
 0x539   :  { %v2226_v42 = vpop.f32.mrb[53].mxu1  ;;  %2419 = vrot.lane.b32.xlu0 %v3090_v22, %s3730_s14 }
 0x53a   :  { %v3091_v19 = vpop.f32.mrb[54].mxu1 }
 0x53b   :  { %v2229_v62 = vpop.f32.mrb[55].mxu1 }
 0x53c   :  { %2417 = vrot.lane.b32.xlu1 %v2229_v62, %s3730_s14 }
 0x53d   :  { %2415 = vrot.lane.b32.xlu0 %v2226_v42, %s3730_s14 }
 0x552   :  { %v3098_v58 = vpop.f32.mrb[24].mxu0 }
 0x553   :  { %v2283_v47 = vpop.f32.mrb[25].mxu0 }
 0x554   :  { %2430 = vrot.lane.b32.xlu0 %v2283_v47, %s3729_s13  ;;  %v3099_v1 = vpop.f32.mrb[26].mxu0 }
 0x555   :  { %v2286_v18 = vpop.f32.mrb[27].mxu0 }
 0x556   :  { %2432 = vrot.lane.b32.xlu1 %v2286_v18, %s3729_s13 }
 0x559   :  { %v3106_v32 = vpop.f32.mrb[56].mxu1 }
 0x55a   :  { %v2340_v41 = vpop.f32.mrb[57].mxu1 }
 0x55b   :  { %v3107_v48 = vpop.f32.mrb[58].mxu1  ;;  %2445 = vrot.lane.b32.xlu0 %v2340_v41, %s3728_s6 }
 0x55c   :  { %v2343_v10 = vpop.f32.mrb[59].mxu1 }
 0x55d   :  { %2447 = vrot.lane.b32.xlu1 %v2343_v10, %s3728_s6 }
 0x55f   :  { %2434 = vrot.lane.b32.xlu0 %v3098_v58, %s3729_s13 }
 0x561   :  { %2365 = vrot.lane.b32.xlu1 %v4368_v16, %s3730_s14 }
 0x563   :  { %2449 = vrot.lane.b32.xlu0 %v3106_v32, %s3728_s6 }
 0x565   :  { %2382 = vrot.lane.b32.xlu1 %v4372_v6, %s3729_s13 }
 0x569   :  { %2399 = vrot.lane.b32.xlu1 %v4376_v27, %s3728_s6 }
 0x56c   :  { %v2362_v37 = vpop.permute.xlu0 %2361 }
 0x56d   :  { %2371 = vst.msk [vmem:[#allocation2] sm:$0xff] %vm2370_vm5, %v2362_v37 }
 0x56e   :  { %v2364_v15 = vpop.permute.xlu1 %2363 }
 0x56f   :  { %2372 = vst.msk [vmem:[#allocation2 + $0x10] sm:$0xff] %vm2370_vm5, %v2364_v15 }
 0x57c   :  { %v2379_v17 = vpop.permute.xlu0 %2378 }
 0x57d   :  { %2388 = vst.msk [vmem:[#allocation2] sm:$0xff] %vm2387_vm6, %v2379_v17 }
 0x57e   :  { %v2381_v35 = vpop.permute.xlu1 %2380 }
 0x57f   :  { %2389 = vst.msk [vmem:[#allocation2 + $0x10] sm:$0xff] %vm2387_vm6, %v2381_v35 }
 0x58c   :  { %v2396_v16 = vpop.permute.xlu0 %2395 }
 0x58d   :  { %2405 = vst.msk [vmem:[#allocation2] sm:$0xff] %vm2404_vm7, %v2396_v16 }
 0x58e   :  { %v2398_v9 = vpop.permute.xlu1 %2397 }
 0x58f   :  { %2406 = vst.msk [vmem:[#allocation2 + $0x10] sm:$0xff] %vm2404_vm7, %v2398_v9 }
 0x594   :  { %v2457_v3 = vld [vmem:[#allocation2] sm:$0xff] }
 0x596   :  { %v2459_v21 = vld [vmem:[#allocation2 + $0x10] sm:$0xff] }
 0x597   :  { %v2463_v56 = vpack.c.bf16 %v2459_v21, %v2457_v3 }
 0x5ab   :  { %v2420_v8 = vpop.permute.xlu0 %2419 }
 0x5ac   :  { %2426 = vst.msk [vmem:[#allocation2 + $0x28] sm:$0xf] %vm2373_vm8, %v2420_v8 }
 0x5ae   :  { %v2418_v5 = vpop.permute.xlu1 %2417 }
 0x5af   :  { %2425 = vst.msk [vmem:[#allocation2 + $0x18] sm:$0xff] %vm2370_vm5, %v2418_v5  ;;  %v2416_v6 = vpop.permute.xlu0 %2415 }
 0x5b0   :  { %2424 = vst.msk [vmem:[#allocation2 + $0x8] sm:$0xff] %vm2370_vm5, %v2416_v6 }
 0x5c6   :  { %v2431_v20 = vpop.permute.xlu0 %2430 }
 0x5c7   :  { %2439 = vst.msk [vmem:[#allocation2 + $0x8] sm:$0xff] %vm2387_vm6, %v2431_v20 }
 0x5c8   :  { %v2433_v14 = vpop.permute.xlu1 %2432 }
 0x5c9   :  { %2440 = vst.msk [vmem:[#allocation2 + $0x18] sm:$0xff] %vm2387_vm6, %v2433_v14 }
 0x5cd   :  { %v2446_v52 = vpop.permute.xlu0 %2445 }
 0x5ce   :  { %2454 = vst.msk [vmem:[#allocation2 + $0x8] sm:$0xff] %vm2404_vm7, %v2446_v52 }
 0x5cf   :  { %v2448_v50 = vpop.permute.xlu1 %2447 }
 0x5d0   :  { %2455 = vst.msk [vmem:[#allocation2 + $0x18] sm:$0xff] %vm2404_vm7, %v2448_v50 }
 0x5d1   :  { %v2435_v11 = vpop.permute.xlu0 %2434 }
 0x5d2   :  { %2441 = vst.msk [vmem:[#allocation2 + $0x28] sm:$0xf] %vm2390_vm9, %v2435_v11 }
 0x5d3   :  { %v2366_v43 = vpop.permute.xlu1 %2365 }
 0x5d4   :  { %2374 = vst.msk [vmem:[#allocation2 + $0x20] sm:$0xf] %vm2373_vm8, %v2366_v43 }
 0x5d5   :  { %v2450_v12 = vpop.permute.xlu0 %2449  ;;  %v2458_v53 = vld [vmem:[#allocation2 + $0x8] sm:$0xff] }
 0x5d6   :  { %2456 = vst.msk [vmem:[#allocation2 + $0x28] sm:$0xf] %vm2407_vm10, %v2450_v12 }
 0x5d7   :  { %v2383_v57 = vpop.permute.xlu1 %2382  ;;  %v2460_v27 = vld [vmem:[#allocation2 + $0x18] sm:$0xff] }
 0x5d8   :  { %2391 = vst.msk [vmem:[#allocation2 + $0x20] sm:$0xf] %vm2390_vm9, %v2383_v57  ;;  %v2464_v33 = vpack.c.bf16 %v2460_v27, %v2458_v53 }
 0x5da   :  { %2703 = vmatprep.mubr.bf16.mxu0 %v2464_v33 }
 0x5db   :  { %2704 = vmatmul.mubr.bf16.vlgmr.msra.gmra.mrb[28].mxu0 %v2463_v56  ;;  %v2400_v29 = vpop.permute.xlu1 %2399 }
 0x5dc   :  { %2408 = vst.msk [vmem:[#allocation2 + $0x20] sm:$0xf] %vm2407_vm10, %v2400_v29 }
 0x5dd   :  { %v2462_v31 = vld [vmem:[#allocation2 + $0x28] sm:$0xf] }
 0x5de   :  { %v2466_v26 = vpack.c.bf16 %v2462_v31, %v2462_v31 }
 0x5e0   :  { %2713 = vmatprep.mubr.bf16.mxu0 %v2466_v26 }
 0x5e3   :  { %v2461_v36 = vld [vmem:[#allocation2 + $0x20] sm:$0xf] }
 0x5e4   :  { %v2465_v63 = vpack.c.bf16 %v2461_v36, %v2461_v36 }
 0x5e6   :  { %2714 = vmatmul.mubr.bf16.gmra.mrb[32].mxu0 %v2465_v63 }
 0x6ae   :  { %v2705_v28 = vpop.f32.mrb[28].mxu0 }
 0x6af   :  { %v2706_v46 = vadd.f32 %v2705_v28, %v2504_v60  ;;  %v2707_v2 = vpop.f32.mrb[29].mxu0 }
 0x6b0   :  { %v2708_v22 = vadd.f32 %v2707_v2, %v2508_v44  ;;  %v2709_v13 = vpop.f32.mrb[30].mxu0 }
 0x6b1   :  { %2722 = vst [vmem:[#allocation14] sm:$0xff] %v2706_v46  ;;  %v2710_v42 = vadd.f32 %v2709_v13, %v2504_v60  ;;  %v2711_v19 = vpop.f32.mrb[31].mxu0 }
 0x6b2   :  { %2723 = vst [vmem:[#allocation14 + $0x8] sm:$0xff] %v2708_v22  ;;  %v2712_v62 = vadd.f32 %v2711_v19, %v2508_v44 }
 0x6b3   :  { %2724 = vst [vmem:[#allocation14 + $0x10] sm:$0xff] %v2710_v42 }
 0x6b4   :  { %2725 = vst [vmem:[#allocation14 + $0x18] sm:$0xff] %v2712_v62 }
 0x6b9   :  { %v2715_v24 = vpop.f32.mrb[32].mxu0 }
 0x6ba   :  { %v2716_v7 = vadd.f32 %v2715_v24, %v2504_v60  ;;  %v2717_v49 = vpop.f32.mrb[33].mxu0 }
 0x6bb   :  { %v2718_v45 = vadd.f32 %v2717_v49, %v2508_v44  ;;  %v2719_v55 = vpop.f32.mrb[34].mxu0 }
 0x6bc   :  { %2726 = vst [vmem:[#allocation14 + $0x20] sm:$0xf] %v2716_v7  ;;  %v2720_v54 = vpop.f32.mrb[35].mxu0 }
 0x6bd   :  { %2727 = vst [vmem:[#allocation14 + $0x28] sm:$0xf] %v2718_v45 }
 0x6be   :  { %3697 = shalt.err (!%p3694_p10)
}
 0x6bf   :  { %s3698_s17 = scalar_lea.hbm %s4437_s7, 768 }
 0x6c0   :  { %p3699_p11 = scmp.ne.s32.totalorder %s4437_s7, %s3698_s17  ;;  %p3702_p12 = scmp.lt.u32.totalorder %s3698_s17, %s4437_s7 }
 0x6c2   :  { %p3704_p13 = pnand %p3702_p12, %p3699_p11 }
 0x6c4   :  { %3707 = shalt.err (!%p3704_p13)
}
 0x6c5   :  { %2739 = dma.vmem_to_hbm [thread:$0]  %s2734_s12, 768, %s4437_s7, [#allocation5], %s3722_s1, %s3722_s1, %s3723_s25  }
 0x6c6   :  { %3716 = dma.done.wait [#allocation5], 768  }
 0x6c7   :  { %3717 = vsyncadd [#allocation5], 4294966528 }
 0x6c8   :  { %2743 = vsyncpa [#allocation4], 1 }
 0x6c9   :  { %2744 = vsyncpa [#allocation7], 1 }
 0x6ca   :  { %2745 = vsyncpa [#allocation10], 1 }
 0x6cb   :  { %2746 = vsyncpa [#allocation13], 1 }
 0x6cc   :  { %2747 = vsyncpa [#allocation5], 1 }

</bundles_post_ra>
